<compile_context>
chip_gen: v5e
topology: v5e:2x2
jax: 0.10.0
libtpu: 0.0.40
codegen_flags: <defaults>
</compile_context>

<pallas_src>
import functools

import jax
import jax.numpy as jnp
from jax import lax
from jax.experimental import pallas as pl
from jax.experimental.pallas import tpu as pltpu


def recovery_kernel(x_ref,                         # (T*B, D) time-major input
                    wihr_ref, wihz_ref, wihn_ref,  # (D, H) each
                    whhr_ref, whhz_ref, whhn_ref,  # (H, H) each
                    bgir_ref, bgiz_ref, bgin_ref,  # (1, H) each (pre-combined)
                    bhn_ref,                       # (1, H) recurrent n-gate bias
                    wfc_ref, bfc_ref,              # (H, O), (1, O)
                    out_ref,                       # (T*B, O)
                    gir_ref, giz_ref, gin_ref,     # VMEM scratch (T*B, H)
                    hall_ref,                      # VMEM scratch (T*B, H)
                    *, seq_len, batch):
    T, B = seq_len, batch
    H = whhr_ref.shape[0]

    # ---- hoisted input-to-hidden projections: one big MXU matmul per gate ----
    xf = x_ref[...]                                              # (T*B, D)
    gir_ref[...] = (jnp.dot(xf, wihr_ref[...],
                            preferred_element_type=jnp.float32) + bgir_ref[...])
    giz_ref[...] = (jnp.dot(xf, wihz_ref[...],
                            preferred_element_type=jnp.float32) + bgiz_ref[...])
    gin_ref[...] = (jnp.dot(xf, wihn_ref[...],
                            preferred_element_type=jnp.float32) + bgin_ref[...])

    # hoist loop-invariant loads / broadcasts out of the serial recurrence
    whh_r = whhr_ref[...]
    whh_z = whhz_ref[...]
    whh_n = whhn_ref[...]
    bhn = jnp.broadcast_to(bhn_ref[...], (B, H))

    # ---- serial GRU recurrence: only h_{t-1} @ W_hh + gates per step ----
    def step(t, h_prev):
        row = pl.multiple_of(t * B, B)                           # B multiple of 8
        ghr = jnp.dot(h_prev, whh_r, preferred_element_type=jnp.float32)
        ghz = jnp.dot(h_prev, whh_z, preferred_element_type=jnp.float32)
        ghn = jnp.dot(h_prev, whh_n, preferred_element_type=jnp.float32) + bhn
        r = jax.nn.sigmoid(gir_ref[pl.ds(row, B), :] + ghr)
        z = jax.nn.sigmoid(giz_ref[pl.ds(row, B), :] + ghz)
        n = jnp.tanh(gin_ref[pl.ds(row, B), :] + r * ghn)
        h_new = (1.0 - z) * n + z * h_prev
        hall_ref[pl.ds(row, B), :] = h_new
        return h_new

    _ = lax.fori_loop(0, T, step, jnp.zeros((B, H), jnp.float32), unroll=True)

    # ---- fc projection over the whole sequence at once, single store ----
    y = (jnp.dot(hall_ref[...], wfc_ref[...],
                 preferred_element_type=jnp.float32) + bfc_ref[...])
    out_ref[...] = y.astype(out_ref.dtype)


@functools.partial(jax.jit, static_argnames=("hidden_dim", "output_dim"))
def recovery_forward(h, params, *, hidden_dim, output_dim):
    """h: (B, T, hidden_dim) float32 -> (B, T, output_dim) float32."""
    B, T, D = h.shape
    H, O = hidden_dim, output_dim
    wih, whh, bih, bhh, wfc, bfc = params

    # pad batch to a multiple of 8 sublanes so per-step slices are tile-aligned
    Bp = ((B + 7) // 8) * 8
    if Bp != B:
        h = jnp.pad(h, ((0, Bp - B), (0, 0), (0, 0)))

    # time-major flat layout: rows ordered (t, b)
    x_tm = jnp.swapaxes(h, 0, 1).reshape(T * Bp, D)

    # split fused gate weights [r | z | n] and pre-combine biases where legal
    wih_r, wih_z, wih_n = wih[:, :H], wih[:, H:2 * H], wih[:, 2 * H:]
    whh_r, whh_z, whh_n = whh[:, :H], whh[:, H:2 * H], whh[:, 2 * H:]
    bgi_r = (bih[:H] + bhh[:H]).reshape(1, H)
    bgi_z = (bih[H:2 * H] + bhh[H:2 * H]).reshape(1, H)
    bgi_n = bih[2 * H:].reshape(1, H)
    bhn = bhh[2 * H:].reshape(1, H)
    bfc2 = bfc.reshape(1, O)

    full = lambda i: (0, 0)
    kernel = functools.partial(recovery_kernel, seq_len=T, batch=Bp)

    y_tm = pl.pallas_call(
        kernel,
        out_shape=jax.ShapeDtypeStruct((T * Bp, O), jnp.float32),
        grid=(1,),
        in_specs=[
            pl.BlockSpec((T * Bp, D), full),   # x (time-major, flattened)
            pl.BlockSpec((D, H), full),        # W_ih_r^T
            pl.BlockSpec((D, H), full),        # W_ih_z^T
            pl.BlockSpec((D, H), full),        # W_ih_n^T
            pl.BlockSpec((H, H), full),        # W_hh_r^T
            pl.BlockSpec((H, H), full),        # W_hh_z^T
            pl.BlockSpec((H, H), full),        # W_hh_n^T
            pl.BlockSpec((1, H), full),        # b_ir + b_hr
            pl.BlockSpec((1, H), full),        # b_iz + b_hz
            pl.BlockSpec((1, H), full),        # b_in
            pl.BlockSpec((1, H), full),        # b_hn
            pl.BlockSpec((H, O), full),        # W_fc^T
            pl.BlockSpec((1, O), full),        # b_fc
        ],
        out_specs=pl.BlockSpec((T * Bp, O), full),
        scratch_shapes=[
            pltpu.VMEM((T * Bp, H), jnp.float32),   # gi_r
            pltpu.VMEM((T * Bp, H), jnp.float32),   # gi_z
            pltpu.VMEM((T * Bp, H), jnp.float32),   # gi_n
            pltpu.VMEM((T * Bp, H), jnp.float32),   # all hidden states
        ],
        compiler_params=pltpu.CompilerParams(
            dimension_semantics=("arbitrary",)),
    )(x_tm, wih_r, wih_z, wih_n, whh_r, whh_z, whh_n,
      bgi_r, bgi_z, bgi_n, bhn, wfc, bfc2)

    # back to PyTorch's batch-first layout, drop batch padding
    return jnp.swapaxes(y_tm.reshape(T, Bp, O), 0, 1)[:B]


def reference_forward(h, params, hidden_dim):
    """Pure-JAX reference with PyTorch GRU + Linear semantics (no final tanh)."""
    wih, whh, bih, bhh, wfc, bfc = params
    B, T, D = h.shape
    H = hidden_dim

    def step(hs, x_t):
        gi = x_t @ wih + bih
        gh = hs @ whh + bhh
        r = jax.nn.sigmoid(gi[:, :H] + gh[:, :H])
        z = jax.nn.sigmoid(gi[:, H:2 * H] + gh[:, H:2 * H])
        n = jnp.tanh(gi[:, 2 * H:] + r * gh[:, 2 * H:])
        h_new = (1.0 - z) * n + z * hs
        return h_new, h_new

    h0 = jnp.zeros((B, H), jnp.float32)
    _, hs = lax.scan(step, h0, jnp.swapaxes(h, 0, 1))   # (T, B, H)
    h_all = jnp.swapaxes(hs, 0, 1)                      # (B, T, H)
    return h_all @ wfc + bfc


def init_params(key, hidden_dim, output_dim):
    """Synthetic params matching nn.GRU(hidden,hidden) / nn.Linear(hidden,out).

    PyTorch stores weight_ih_l0: (3H, H), weight_hh_l0: (3H, H), fc.weight: (O, H).
    We keep them transposed so the kernel does plain x @ W.
    """
    H, O = hidden_dim, output_dim
    ks = jax.random.split(key, 6)
    scale = 1.0 / jnp.sqrt(jnp.float32(H))
    wih = jax.random.uniform(ks[0], (H, 3 * H), jnp.float32, -scale, scale)
    whh = jax.random.uniform(ks[1], (H, 3 * H), jnp.float32, -scale, scale)
    bih = jax.random.uniform(ks[2], (3 * H,), jnp.float32, -scale, scale)
    bhh = jax.random.uniform(ks[3], (3 * H,), jnp.float32, -scale, scale)
    wfc = jax.random.uniform(ks[4], (H, O), jnp.float32, -scale, scale)
    bfc = jax.random.uniform(ks[5], (O,), jnp.float32, -scale, scale)
    return (wih, whh, bih, bhh, wfc, bfc)


if __name__ == "__main__":
    B, T, H, O = 8, 8, 32, 24   # batch, seq_len, hidden_dim, output_dim

    key = jax.random.PRNGKey(0)
    k_x, k_p = jax.random.split(key)
    x = jax.random.normal(k_x, (B, T, H), jnp.float32)
    params = init_params(k_p, H, O)

    out = recovery_forward(x, params, hidden_dim=H, output_dim=O)
    out = jax.block_until_ready(out)

    ref = reference_forward(x, params, H)
    assert out.shape == (B, T, O)
    assert jnp.allclose(out, ref, atol=1e-4, rtol=1e-4), "mismatch vs JAX reference"

    print("KERNEL_OK")
</pallas_src>

<mosaic_0001>
module attributes {stable_mosaic.version = 11 : i64} {
  func.func @recovery_kernel(%arg0: i32, %arg1: memref<64x32xf32, #tpu.memory_space<vmem>>, %arg2: memref<32x32xf32, #tpu.memory_space<vmem>>, %arg3: memref<32x32xf32, #tpu.memory_space<vmem>>, %arg4: memref<32x32xf32, #tpu.memory_space<vmem>>, %arg5: memref<32x32xf32, #tpu.memory_space<vmem>>, %arg6: memref<32x32xf32, #tpu.memory_space<vmem>>, %arg7: memref<32x32xf32, #tpu.memory_space<vmem>>, %arg8: memref<1x32xf32, #tpu.memory_space<vmem>>, %arg9: memref<1x32xf32, #tpu.memory_space<vmem>>, %arg10: memref<1x32xf32, #tpu.memory_space<vmem>>, %arg11: memref<1x32xf32, #tpu.memory_space<vmem>>, %arg12: memref<32x24xf32, #tpu.memory_space<vmem>>, %arg13: memref<1x24xf32, #tpu.memory_space<vmem>>, %arg14: memref<64x24xf32, #tpu.memory_space<vmem>>, %arg15: memref<64x32xf32, #tpu.memory_space<vmem>>, %arg16: memref<64x32xf32, #tpu.memory_space<vmem>>, %arg17: memref<64x32xf32, #tpu.memory_space<vmem>>, %arg18: memref<64x32xf32, #tpu.memory_space<vmem>>) attributes {dimension_semantics = [#tpu.dimension_semantics<arbitrary>], iteration_bounds = array<i64: 1>, scalar_prefetch = 0 : i64, scratch_operands = 4 : i64, tpu.core_type = #tpu.core_type<tc>, window_params = [{pipeline_mode = #tpu.pipeline_mode<synchronous>, transform_indices = @transform_0, window_bounds = array<i64: 64, 32>}, {pipeline_mode = #tpu.pipeline_mode<synchronous>, transform_indices = @transform_1, window_bounds = array<i64: 32, 32>}, {pipeline_mode = #tpu.pipeline_mode<synchronous>, transform_indices = @transform_2, window_bounds = array<i64: 32, 32>}, {pipeline_mode = #tpu.pipeline_mode<synchronous>, transform_indices = @transform_3, window_bounds = array<i64: 32, 32>}, {pipeline_mode = #tpu.pipeline_mode<synchronous>, transform_indices = @transform_4, window_bounds = array<i64: 32, 32>}, {pipeline_mode = #tpu.pipeline_mode<synchronous>, transform_indices = @transform_5, window_bounds = array<i64: 32, 32>}, {pipeline_mode = #tpu.pipeline_mode<synchronous>, transform_indices = @transform_6, window_bounds = array<i64: 32, 32>}, {pipeline_mode = #tpu.pipeline_mode<synchronous>, transform_indices = @transform_7, window_bounds = array<i64: 1, 32>}, {pipeline_mode = #tpu.pipeline_mode<synchronous>, transform_indices = @transform_8, window_bounds = array<i64: 1, 32>}, {pipeline_mode = #tpu.pipeline_mode<synchronous>, transform_indices = @transform_9, window_bounds = array<i64: 1, 32>}, {pipeline_mode = #tpu.pipeline_mode<synchronous>, transform_indices = @transform_10, window_bounds = array<i64: 1, 32>}, {pipeline_mode = #tpu.pipeline_mode<synchronous>, transform_indices = @transform_11, window_bounds = array<i64: 32, 24>}, {pipeline_mode = #tpu.pipeline_mode<synchronous>, transform_indices = @transform_12, window_bounds = array<i64: 1, 24>}, {pipeline_mode = #tpu.pipeline_mode<synchronous>, transform_indices = @transform_13, window_bounds = array<i64: 64, 24>}]} {
    %c0 = arith.constant 0 : index
    %c0_0 = arith.constant 0 : index
    %0 = vector.load %arg1[%c0, %c0_0] : memref<64x32xf32, #tpu.memory_space<vmem>>, vector<64x32xf32>
    %c0_1 = arith.constant 0 : index
    %c0_2 = arith.constant 0 : index
    %1 = vector.load %arg2[%c0_1, %c0_2] : memref<32x32xf32, #tpu.memory_space<vmem>>, vector<32x32xf32>
    %cst = arith.constant dense<0.000000e+00> : vector<64x32xf32>
    %2 = tpu.matmul %0, %1, %cst {dimension_numbers = #tpu.dot_dimension_numbers<[1], [0], [0], [1], [0, 0, 1, 1], [], []>} : vector<64x32xf32>, vector<32x32xf32>, vector<64x32xf32> -> vector<64x32xf32>
    %c0_3 = arith.constant 0 : index
    %c0_4 = arith.constant 0 : index
    %3 = vector.load %arg8[%c0_3, %c0_4] : memref<1x32xf32, #tpu.memory_space<vmem>>, vector<1x32xf32>
    %4 = vector.broadcast %3 : vector<1x32xf32> to vector<64x32xf32>
    %5 = arith.addf %2, %4 : vector<64x32xf32>
    %c0_5 = arith.constant 0 : index
    %c0_6 = arith.constant 0 : index
    %6 = vector.load %arg15[%c0_5, %c0_6] : memref<64x32xf32, #tpu.memory_space<vmem>>, vector<64x32xf32>
    tpu.vector_store %arg15[%c0_5, %c0_6], %5 {strides = array<i32>} : memref<64x32xf32, #tpu.memory_space<vmem>>, vector<64x32xf32>,
    %c0_7 = arith.constant 0 : index
    %c0_8 = arith.constant 0 : index
    %7 = vector.load %arg3[%c0_7, %c0_8] : memref<32x32xf32, #tpu.memory_space<vmem>>, vector<32x32xf32>
    %cst_9 = arith.constant dense<0.000000e+00> : vector<64x32xf32>
    %8 = tpu.matmul %0, %7, %cst_9 {dimension_numbers = #tpu.dot_dimension_numbers<[1], [0], [0], [1], [0, 0, 1, 1], [], []>} : vector<64x32xf32>, vector<32x32xf32>, vector<64x32xf32> -> vector<64x32xf32>
    %c0_10 = arith.constant 0 : index
    %c0_11 = arith.constant 0 : index
    %9 = vector.load %arg9[%c0_10, %c0_11] : memref<1x32xf32, #tpu.memory_space<vmem>>, vector<1x32xf32>
    %10 = vector.broadcast %9 : vector<1x32xf32> to vector<64x32xf32>
    %11 = arith.addf %8, %10 : vector<64x32xf32>
    %c0_12 = arith.constant 0 : index
    %c0_13 = arith.constant 0 : index
    %12 = vector.load %arg16[%c0_12, %c0_13] : memref<64x32xf32, #tpu.memory_space<vmem>>, vector<64x32xf32>
    tpu.vector_store %arg16[%c0_12, %c0_13], %11 {strides = array<i32>} : memref<64x32xf32, #tpu.memory_space<vmem>>, vector<64x32xf32>,
    %c0_14 = arith.constant 0 : index
    %c0_15 = arith.constant 0 : index
    %13 = vector.load %arg4[%c0_14, %c0_15] : memref<32x32xf32, #tpu.memory_space<vmem>>, vector<32x32xf32>
    %cst_16 = arith.constant dense<0.000000e+00> : vector<64x32xf32>
    %14 = tpu.matmul %0, %13, %cst_16 {dimension_numbers = #tpu.dot_dimension_numbers<[1], [0], [0], [1], [0, 0, 1, 1], [], []>} : vector<64x32xf32>, vector<32x32xf32>, vector<64x32xf32> -> vector<64x32xf32>
    %c0_17 = arith.constant 0 : index
    %c0_18 = arith.constant 0 : index
    %15 = vector.load %arg10[%c0_17, %c0_18] : memref<1x32xf32, #tpu.memory_space<vmem>>, vector<1x32xf32>
    %16 = vector.broadcast %15 : vector<1x32xf32> to vector<64x32xf32>
    %17 = arith.addf %14, %16 : vector<64x32xf32>
    %c0_19 = arith.constant 0 : index
    %c0_20 = arith.constant 0 : index
    %18 = vector.load %arg17[%c0_19, %c0_20] : memref<64x32xf32, #tpu.memory_space<vmem>>, vector<64x32xf32>
    tpu.vector_store %arg17[%c0_19, %c0_20], %17 {strides = array<i32>} : memref<64x32xf32, #tpu.memory_space<vmem>>, vector<64x32xf32>,
    %c0_21 = arith.constant 0 : index
    %c0_22 = arith.constant 0 : index
    %19 = vector.load %arg5[%c0_21, %c0_22] : memref<32x32xf32, #tpu.memory_space<vmem>>, vector<32x32xf32>
    %c0_23 = arith.constant 0 : index
    %c0_24 = arith.constant 0 : index
    %20 = vector.load %arg6[%c0_23, %c0_24] : memref<32x32xf32, #tpu.memory_space<vmem>>, vector<32x32xf32>
    %c0_25 = arith.constant 0 : index
    %c0_26 = arith.constant 0 : index
    %21 = vector.load %arg7[%c0_25, %c0_26] : memref<32x32xf32, #tpu.memory_space<vmem>>, vector<32x32xf32>
    %c0_27 = arith.constant 0 : index
    %c0_28 = arith.constant 0 : index
    %22 = vector.load %arg11[%c0_27, %c0_28] : memref<1x32xf32, #tpu.memory_space<vmem>>, vector<1x32xf32>
    %23 = vector.shape_cast %22 : vector<1x32xf32> to vector<1x32xf32>
    %24 = vector.broadcast %23 : vector<1x32xf32> to vector<8x32xf32>
    %cst_29 = arith.constant 0.000000e+00 : f32
    %25 = vector.broadcast %cst_29 : f32 to vector<8x32xf32>
    %c0_i32 = arith.constant 0 : i32
    %c8_i32 = arith.constant 8 : i32
    %26 = arith.muli %c0_i32, %c8_i32 : i32
    %27 = tpu.assume_multiple %26, 8 : i32
    %cst_30 = arith.constant dense<0.000000e+00> : vector<8x32xf32>
    %28 = tpu.matmul %25, %19, %cst_30 {dimension_numbers = #tpu.dot_dimension_numbers<[1], [0], [0], [1], [0, 0, 1, 1], [], []>} : vector<8x32xf32>, vector<32x32xf32>, vector<8x32xf32> -> vector<8x32xf32>
    %cst_31 = arith.constant dense<0.000000e+00> : vector<8x32xf32>
    %29 = tpu.matmul %25, %20, %cst_31 {dimension_numbers = #tpu.dot_dimension_numbers<[1], [0], [0], [1], [0, 0, 1, 1], [], []>} : vector<8x32xf32>, vector<32x32xf32>, vector<8x32xf32> -> vector<8x32xf32>
    %cst_32 = arith.constant dense<0.000000e+00> : vector<8x32xf32>
    %30 = tpu.matmul %25, %21, %cst_32 {dimension_numbers = #tpu.dot_dimension_numbers<[1], [0], [0], [1], [0, 0, 1, 1], [], []>} : vector<8x32xf32>, vector<32x32xf32>, vector<8x32xf32> -> vector<8x32xf32>
    %31 = arith.addf %30, %24 : vector<8x32xf32>
    %32 = arith.index_cast %27 : i32 to index
    %c0_33 = arith.constant 0 : index
    %33 = vector.load %arg15[%32, %c0_33] : memref<64x32xf32, #tpu.memory_space<vmem>>, vector<8x32xf32>
    %34 = arith.addf %33, %28 : vector<8x32xf32>
    %35 = arith.negf %34 : vector<8x32xf32>
    %36 = math.exp %35 : vector<8x32xf32>
    %cst_34 = arith.constant 1.000000e+00 : f32
    %37 = vector.broadcast %cst_34 : f32 to vector<8x32xf32>
    %38 = arith.addf %37, %36 : vector<8x32xf32>
    %39 = arith.divf %37, %38 : vector<8x32xf32>
    %40 = arith.index_cast %27 : i32 to index
    %c0_35 = arith.constant 0 : index
    %41 = vector.load %arg16[%40, %c0_35] : memref<64x32xf32, #tpu.memory_space<vmem>>, vector<8x32xf32>
    %42 = arith.addf %41, %29 : vector<8x32xf32>
    %43 = arith.negf %42 : vector<8x32xf32>
    %44 = math.exp %43 : vector<8x32xf32>
    %cst_36 = arith.constant 1.000000e+00 : f32
    %45 = vector.broadcast %cst_36 : f32 to vector<8x32xf32>
    %46 = arith.addf %45, %44 : vector<8x32xf32>
    %47 = arith.divf %45, %46 : vector<8x32xf32>
    %48 = arith.index_cast %27 : i32 to index
    %c0_37 = arith.constant 0 : index
    %49 = vector.load %arg17[%48, %c0_37] : memref<64x32xf32, #tpu.memory_space<vmem>>, vector<8x32xf32>
    %50 = arith.mulf %39, %31 : vector<8x32xf32>
    %51 = arith.addf %49, %50 : vector<8x32xf32>
    %52 = math.tanh %51 : vector<8x32xf32>
    %cst_38 = arith.constant 1.000000e+00 : f32
    %53 = vector.broadcast %cst_38 : f32 to vector<8x32xf32>
    %54 = arith.subf %53, %47 : vector<8x32xf32>
    %55 = arith.mulf %54, %52 : vector<8x32xf32>
    %56 = arith.mulf %47, %25 : vector<8x32xf32>
    %57 = arith.addf %55, %56 : vector<8x32xf32>
    %58 = arith.index_cast %27 : i32 to index
    %c0_39 = arith.constant 0 : index
    %59 = vector.load %arg18[%58, %c0_39] : memref<64x32xf32, #tpu.memory_space<vmem>>, vector<8x32xf32>
    tpu.vector_store %arg18[%58, %c0_39], %57 {strides = array<i32>} : memref<64x32xf32, #tpu.memory_space<vmem>>, vector<8x32xf32>,
    %c1_i32 = arith.constant 1 : i32
    %c8_i32_40 = arith.constant 8 : i32
    %60 = arith.muli %c1_i32, %c8_i32_40 : i32
    %61 = tpu.assume_multiple %60, 8 : i32
    %cst_41 = arith.constant dense<0.000000e+00> : vector<8x32xf32>
    %62 = tpu.matmul %57, %19, %cst_41 {dimension_numbers = #tpu.dot_dimension_numbers<[1], [0], [0], [1], [0, 0, 1, 1], [], []>} : vector<8x32xf32>, vector<32x32xf32>, vector<8x32xf32> -> vector<8x32xf32>
    %cst_42 = arith.constant dense<0.000000e+00> : vector<8x32xf32>
    %63 = tpu.matmul %57, %20, %cst_42 {dimension_numbers = #tpu.dot_dimension_numbers<[1], [0], [0], [1], [0, 0, 1, 1], [], []>} : vector<8x32xf32>, vector<32x32xf32>, vector<8x32xf32> -> vector<8x32xf32>
    %cst_43 = arith.constant dense<0.000000e+00> : vector<8x32xf32>
    %64 = tpu.matmul %57, %21, %cst_43 {dimension_numbers = #tpu.dot_dimension_numbers<[1], [0], [0], [1], [0, 0, 1, 1], [], []>} : vector<8x32xf32>, vector<32x32xf32>, vector<8x32xf32> -> vector<8x32xf32>
    %65 = arith.addf %64, %24 : vector<8x32xf32>
    %66 = arith.index_cast %61 : i32 to index
    %c0_44 = arith.constant 0 : index
    %67 = vector.load %arg15[%66, %c0_44] : memref<64x32xf32, #tpu.memory_space<vmem>>, vector<8x32xf32>
    %68 = arith.addf %67, %62 : vector<8x32xf32>
    %69 = arith.negf %68 : vector<8x32xf32>
    %70 = math.exp %69 : vector<8x32xf32>
    %cst_45 = arith.constant 1.000000e+00 : f32
    %71 = vector.broadcast %cst_45 : f32 to vector<8x32xf32>
    %72 = arith.addf %71, %70 : vector<8x32xf32>
    %73 = arith.divf %71, %72 : vector<8x32xf32>
    %74 = arith.index_cast %61 : i32 to index
    %c0_46 = arith.constant 0 : index
    %75 = vector.load %arg16[%74, %c0_46] : memref<64x32xf32, #tpu.memory_space<vmem>>, vector<8x32xf32>
    %76 = arith.addf %75, %63 : vector<8x32xf32>
    %77 = arith.negf %76 : vector<8x32xf32>
    %78 = math.exp %77 : vector<8x32xf32>
    %cst_47 = arith.constant 1.000000e+00 : f32
    %79 = vector.broadcast %cst_47 : f32 to vector<8x32xf32>
    %80 = arith.addf %79, %78 : vector<8x32xf32>
    %81 = arith.divf %79, %80 : vector<8x32xf32>
    %82 = arith.index_cast %61 : i32 to index
    %c0_48 = arith.constant 0 : index
    %83 = vector.load %arg17[%82, %c0_48] : memref<64x32xf32, #tpu.memory_space<vmem>>, vector<8x32xf32>
    %84 = arith.mulf %73, %65 : vector<8x32xf32>
    %85 = arith.addf %83, %84 : vector<8x32xf32>
    %86 = math.tanh %85 : vector<8x32xf32>
    %cst_49 = arith.constant 1.000000e+00 : f32
    %87 = vector.broadcast %cst_49 : f32 to vector<8x32xf32>
    %88 = arith.subf %87, %81 : vector<8x32xf32>
    %89 = arith.mulf %88, %86 : vector<8x32xf32>
    %90 = arith.mulf %81, %57 : vector<8x32xf32>
    %91 = arith.addf %89, %90 : vector<8x32xf32>
    %92 = arith.index_cast %61 : i32 to index
    %c0_50 = arith.constant 0 : index
    %93 = vector.load %arg18[%92, %c0_50] : memref<64x32xf32, #tpu.memory_space<vmem>>, vector<8x32xf32>
    tpu.vector_store %arg18[%92, %c0_50], %91 {strides = array<i32>} : memref<64x32xf32, #tpu.memory_space<vmem>>, vector<8x32xf32>,
    %c2_i32 = arith.constant 2 : i32
    %c8_i32_51 = arith.constant 8 : i32
    %94 = arith.muli %c2_i32, %c8_i32_51 : i32
    %95 = tpu.assume_multiple %94, 8 : i32
    %cst_52 = arith.constant dense<0.000000e+00> : vector<8x32xf32>
    %96 = tpu.matmul %91, %19, %cst_52 {dimension_numbers = #tpu.dot_dimension_numbers<[1], [0], [0], [1], [0, 0, 1, 1], [], []>} : vector<8x32xf32>, vector<32x32xf32>, vector<8x32xf32> -> vector<8x32xf32>
    %cst_53 = arith.constant dense<0.000000e+00> : vector<8x32xf32>
    %97 = tpu.matmul %91, %20, %cst_53 {dimension_numbers = #tpu.dot_dimension_numbers<[1], [0], [0], [1], [0, 0, 1, 1], [], []>} : vector<8x32xf32>, vector<32x32xf32>, vector<8x32xf32> -> vector<8x32xf32>
    %cst_54 = arith.constant dense<0.000000e+00> : vector<8x32xf32>
    %98 = tpu.matmul %91, %21, %cst_54 {dimension_numbers = #tpu.dot_dimension_numbers<[1], [0], [0], [1], [0, 0, 1, 1], [], []>} : vector<8x32xf32>, vector<32x32xf32>, vector<8x32xf32> -> vector<8x32xf32>
    %99 = arith.addf %98, %24 : vector<8x32xf32>
    %100 = arith.index_cast %95 : i32 to index
    %c0_55 = arith.constant 0 : index
    %101 = vector.load %arg15[%100, %c0_55] : memref<64x32xf32, #tpu.memory_space<vmem>>, vector<8x32xf32>
    %102 = arith.addf %101, %96 : vector<8x32xf32>
    %103 = arith.negf %102 : vector<8x32xf32>
    %104 = math.exp %103 : vector<8x32xf32>
    %cst_56 = arith.constant 1.000000e+00 : f32
    %105 = vector.broadcast %cst_56 : f32 to vector<8x32xf32>
    %106 = arith.addf %105, %104 : vector<8x32xf32>
    %107 = arith.divf %105, %106 : vector<8x32xf32>
    %108 = arith.index_cast %95 : i32 to index
    %c0_57 = arith.constant 0 : index
    %109 = vector.load %arg16[%108, %c0_57] : memref<64x32xf32, #tpu.memory_space<vmem>>, vector<8x32xf32>
    %110 = arith.addf %109, %97 : vector<8x32xf32>
    %111 = arith.negf %110 : vector<8x32xf32>
    %112 = math.exp %111 : vector<8x32xf32>
    %cst_58 = arith.constant 1.000000e+00 : f32
    %113 = vector.broadcast %cst_58 : f32 to vector<8x32xf32>
    %114 = arith.addf %113, %112 : vector<8x32xf32>
    %115 = arith.divf %113, %114 : vector<8x32xf32>
    %116 = arith.index_cast %95 : i32 to index
    %c0_59 = arith.constant 0 : index
    %117 = vector.load %arg17[%116, %c0_59] : memref<64x32xf32, #tpu.memory_space<vmem>>, vector<8x32xf32>
    %118 = arith.mulf %107, %99 : vector<8x32xf32>
    %119 = arith.addf %117, %118 : vector<8x32xf32>
    %120 = math.tanh %119 : vector<8x32xf32>
    %cst_60 = arith.constant 1.000000e+00 : f32
    %121 = vector.broadcast %cst_60 : f32 to vector<8x32xf32>
    %122 = arith.subf %121, %115 : vector<8x32xf32>
    %123 = arith.mulf %122, %120 : vector<8x32xf32>
    %124 = arith.mulf %115, %91 : vector<8x32xf32>
    %125 = arith.addf %123, %124 : vector<8x32xf32>
    %126 = arith.index_cast %95 : i32 to index
    %c0_61 = arith.constant 0 : index
    %127 = vector.load %arg18[%126, %c0_61] : memref<64x32xf32, #tpu.memory_space<vmem>>, vector<8x32xf32>
    tpu.vector_store %arg18[%126, %c0_61], %125 {strides = array<i32>} : memref<64x32xf32, #tpu.memory_space<vmem>>, vector<8x32xf32>,
    %c3_i32 = arith.constant 3 : i32
    %c8_i32_62 = arith.constant 8 : i32
    %128 = arith.muli %c3_i32, %c8_i32_62 : i32
    %129 = tpu.assume_multiple %128, 8 : i32
    %cst_63 = arith.constant dense<0.000000e+00> : vector<8x32xf32>
    %130 = tpu.matmul %125, %19, %cst_63 {dimension_numbers = #tpu.dot_dimension_numbers<[1], [0], [0], [1], [0, 0, 1, 1], [], []>} : vector<8x32xf32>, vector<32x32xf32>, vector<8x32xf32> -> vector<8x32xf32>
    %cst_64 = arith.constant dense<0.000000e+00> : vector<8x32xf32>
    %131 = tpu.matmul %125, %20, %cst_64 {dimension_numbers = #tpu.dot_dimension_numbers<[1], [0], [0], [1], [0, 0, 1, 1], [], []>} : vector<8x32xf32>, vector<32x32xf32>, vector<8x32xf32> -> vector<8x32xf32>
    %cst_65 = arith.constant dense<0.000000e+00> : vector<8x32xf32>
    %132 = tpu.matmul %125, %21, %cst_65 {dimension_numbers = #tpu.dot_dimension_numbers<[1], [0], [0], [1], [0, 0, 1, 1], [], []>} : vector<8x32xf32>, vector<32x32xf32>, vector<8x32xf32> -> vector<8x32xf32>
    %133 = arith.addf %132, %24 : vector<8x32xf32>
    %134 = arith.index_cast %129 : i32 to index
    %c0_66 = arith.constant 0 : index
    %135 = vector.load %arg15[%134, %c0_66] : memref<64x32xf32, #tpu.memory_space<vmem>>, vector<8x32xf32>
    %136 = arith.addf %135, %130 : vector<8x32xf32>
    %137 = arith.negf %136 : vector<8x32xf32>
    %138 = math.exp %137 : vector<8x32xf32>
    %cst_67 = arith.constant 1.000000e+00 : f32
    %139 = vector.broadcast %cst_67 : f32 to vector<8x32xf32>
    %140 = arith.addf %139, %138 : vector<8x32xf32>
    %141 = arith.divf %139, %140 : vector<8x32xf32>
    %142 = arith.index_cast %129 : i32 to index
    %c0_68 = arith.constant 0 : index
    %143 = vector.load %arg16[%142, %c0_68] : memref<64x32xf32, #tpu.memory_space<vmem>>, vector<8x32xf32>
    %144 = arith.addf %143, %131 : vector<8x32xf32>
    %145 = arith.negf %144 : vector<8x32xf32>
    %146 = math.exp %145 : vector<8x32xf32>
    %cst_69 = arith.constant 1.000000e+00 : f32
    %147 = vector.broadcast %cst_69 : f32 to vector<8x32xf32>
    %148 = arith.addf %147, %146 : vector<8x32xf32>
    %149 = arith.divf %147, %148 : vector<8x32xf32>
    %150 = arith.index_cast %129 : i32 to index
    %c0_70 = arith.constant 0 : index
    %151 = vector.load %arg17[%150, %c0_70] : memref<64x32xf32, #tpu.memory_space<vmem>>, vector<8x32xf32>
    %152 = arith.mulf %141, %133 : vector<8x32xf32>
    %153 = arith.addf %151, %152 : vector<8x32xf32>
    %154 = math.tanh %153 : vector<8x32xf32>
    %cst_71 = arith.constant 1.000000e+00 : f32
    %155 = vector.broadcast %cst_71 : f32 to vector<8x32xf32>
    %156 = arith.subf %155, %149 : vector<8x32xf32>
    %157 = arith.mulf %156, %154 : vector<8x32xf32>
    %158 = arith.mulf %149, %125 : vector<8x32xf32>
    %159 = arith.addf %157, %158 : vector<8x32xf32>
    %160 = arith.index_cast %129 : i32 to index
    %c0_72 = arith.constant 0 : index
    %161 = vector.load %arg18[%160, %c0_72] : memref<64x32xf32, #tpu.memory_space<vmem>>, vector<8x32xf32>
    tpu.vector_store %arg18[%160, %c0_72], %159 {strides = array<i32>} : memref<64x32xf32, #tpu.memory_space<vmem>>, vector<8x32xf32>,
    %c4_i32 = arith.constant 4 : i32
    %c8_i32_73 = arith.constant 8 : i32
    %162 = arith.muli %c4_i32, %c8_i32_73 : i32
    %163 = tpu.assume_multiple %162, 8 : i32
    %cst_74 = arith.constant dense<0.000000e+00> : vector<8x32xf32>
    %164 = tpu.matmul %159, %19, %cst_74 {dimension_numbers = #tpu.dot_dimension_numbers<[1], [0], [0], [1], [0, 0, 1, 1], [], []>} : vector<8x32xf32>, vector<32x32xf32>, vector<8x32xf32> -> vector<8x32xf32>
    %cst_75 = arith.constant dense<0.000000e+00> : vector<8x32xf32>
    %165 = tpu.matmul %159, %20, %cst_75 {dimension_numbers = #tpu.dot_dimension_numbers<[1], [0], [0], [1], [0, 0, 1, 1], [], []>} : vector<8x32xf32>, vector<32x32xf32>, vector<8x32xf32> -> vector<8x32xf32>
    %cst_76 = arith.constant dense<0.000000e+00> : vector<8x32xf32>
    %166 = tpu.matmul %159, %21, %cst_76 {dimension_numbers = #tpu.dot_dimension_numbers<[1], [0], [0], [1], [0, 0, 1, 1], [], []>} : vector<8x32xf32>, vector<32x32xf32>, vector<8x32xf32> -> vector<8x32xf32>
    %167 = arith.addf %166, %24 : vector<8x32xf32>
    %168 = arith.index_cast %163 : i32 to index
    %c0_77 = arith.constant 0 : index
    %169 = vector.load %arg15[%168, %c0_77] : memref<64x32xf32, #tpu.memory_space<vmem>>, vector<8x32xf32>
    %170 = arith.addf %169, %164 : vector<8x32xf32>
    %171 = arith.negf %170 : vector<8x32xf32>
    %172 = math.exp %171 : vector<8x32xf32>
    %cst_78 = arith.constant 1.000000e+00 : f32
    %173 = vector.broadcast %cst_78 : f32 to vector<8x32xf32>
    %174 = arith.addf %173, %172 : vector<8x32xf32>
    %175 = arith.divf %173, %174 : vector<8x32xf32>
    %176 = arith.index_cast %163 : i32 to index
    %c0_79 = arith.constant 0 : index
    %177 = vector.load %arg16[%176, %c0_79] : memref<64x32xf32, #tpu.memory_space<vmem>>, vector<8x32xf32>
    %178 = arith.addf %177, %165 : vector<8x32xf32>
    %179 = arith.negf %178 : vector<8x32xf32>
    %180 = math.exp %179 : vector<8x32xf32>
    %cst_80 = arith.constant 1.000000e+00 : f32
    %181 = vector.broadcast %cst_80 : f32 to vector<8x32xf32>
    %182 = arith.addf %181, %180 : vector<8x32xf32>
    %183 = arith.divf %181, %182 : vector<8x32xf32>
    %184 = arith.index_cast %163 : i32 to index
    %c0_81 = arith.constant 0 : index
    %185 = vector.load %arg17[%184, %c0_81] : memref<64x32xf32, #tpu.memory_space<vmem>>, vector<8x32xf32>
    %186 = arith.mulf %175, %167 : vector<8x32xf32>
    %187 = arith.addf %185, %186 : vector<8x32xf32>
    %188 = math.tanh %187 : vector<8x32xf32>
    %cst_82 = arith.constant 1.000000e+00 : f32
    %189 = vector.broadcast %cst_82 : f32 to vector<8x32xf32>
    %190 = arith.subf %189, %183 : vector<8x32xf32>
    %191 = arith.mulf %190, %188 : vector<8x32xf32>
    %192 = arith.mulf %183, %159 : vector<8x32xf32>
    %193 = arith.addf %191, %192 : vector<8x32xf32>
    %194 = arith.index_cast %163 : i32 to index
    %c0_83 = arith.constant 0 : index
    %195 = vector.load %arg18[%194, %c0_83] : memref<64x32xf32, #tpu.memory_space<vmem>>, vector<8x32xf32>
    tpu.vector_store %arg18[%194, %c0_83], %193 {strides = array<i32>} : memref<64x32xf32, #tpu.memory_space<vmem>>, vector<8x32xf32>,
    %c5_i32 = arith.constant 5 : i32
    %c8_i32_84 = arith.constant 8 : i32
    %196 = arith.muli %c5_i32, %c8_i32_84 : i32
    %197 = tpu.assume_multiple %196, 8 : i32
    %cst_85 = arith.constant dense<0.000000e+00> : vector<8x32xf32>
    %198 = tpu.matmul %193, %19, %cst_85 {dimension_numbers = #tpu.dot_dimension_numbers<[1], [0], [0], [1], [0, 0, 1, 1], [], []>} : vector<8x32xf32>, vector<32x32xf32>, vector<8x32xf32> -> vector<8x32xf32>
    %cst_86 = arith.constant dense<0.000000e+00> : vector<8x32xf32>
    %199 = tpu.matmul %193, %20, %cst_86 {dimension_numbers = #tpu.dot_dimension_numbers<[1], [0], [0], [1], [0, 0, 1, 1], [], []>} : vector<8x32xf32>, vector<32x32xf32>, vector<8x32xf32> -> vector<8x32xf32>
    %cst_87 = arith.constant dense<0.000000e+00> : vector<8x32xf32>
    %200 = tpu.matmul %193, %21, %cst_87 {dimension_numbers = #tpu.dot_dimension_numbers<[1], [0], [0], [1], [0, 0, 1, 1], [], []>} : vector<8x32xf32>, vector<32x32xf32>, vector<8x32xf32> -> vector<8x32xf32>
    %201 = arith.addf %200, %24 : vector<8x32xf32>
    %202 = arith.index_cast %197 : i32 to index
    %c0_88 = arith.constant 0 : index
    %203 = vector.load %arg15[%202, %c0_88] : memref<64x32xf32, #tpu.memory_space<vmem>>, vector<8x32xf32>
    %204 = arith.addf %203, %198 : vector<8x32xf32>
    %205 = arith.negf %204 : vector<8x32xf32>
    %206 = math.exp %205 : vector<8x32xf32>
    %cst_89 = arith.constant 1.000000e+00 : f32
    %207 = vector.broadcast %cst_89 : f32 to vector<8x32xf32>
    %208 = arith.addf %207, %206 : vector<8x32xf32>
    %209 = arith.divf %207, %208 : vector<8x32xf32>
    %210 = arith.index_cast %197 : i32 to index
    %c0_90 = arith.constant 0 : index
    %211 = vector.load %arg16[%210, %c0_90] : memref<64x32xf32, #tpu.memory_space<vmem>>, vector<8x32xf32>
    %212 = arith.addf %211, %199 : vector<8x32xf32>
    %213 = arith.negf %212 : vector<8x32xf32>
    %214 = math.exp %213 : vector<8x32xf32>
    %cst_91 = arith.constant 1.000000e+00 : f32
    %215 = vector.broadcast %cst_91 : f32 to vector<8x32xf32>
    %216 = arith.addf %215, %214 : vector<8x32xf32>
    %217 = arith.divf %215, %216 : vector<8x32xf32>
    %218 = arith.index_cast %197 : i32 to index
    %c0_92 = arith.constant 0 : index
    %219 = vector.load %arg17[%218, %c0_92] : memref<64x32xf32, #tpu.memory_space<vmem>>, vector<8x32xf32>
    %220 = arith.mulf %209, %201 : vector<8x32xf32>
    %221 = arith.addf %219, %220 : vector<8x32xf32>
    %222 = math.tanh %221 : vector<8x32xf32>
    %cst_93 = arith.constant 1.000000e+00 : f32
    %223 = vector.broadcast %cst_93 : f32 to vector<8x32xf32>
    %224 = arith.subf %223, %217 : vector<8x32xf32>
    %225 = arith.mulf %224, %222 : vector<8x32xf32>
    %226 = arith.mulf %217, %193 : vector<8x32xf32>
    %227 = arith.addf %225, %226 : vector<8x32xf32>
    %228 = arith.index_cast %197 : i32 to index
    %c0_94 = arith.constant 0 : index
    %229 = vector.load %arg18[%228, %c0_94] : memref<64x32xf32, #tpu.memory_space<vmem>>, vector<8x32xf32>
    tpu.vector_store %arg18[%228, %c0_94], %227 {strides = array<i32>} : memref<64x32xf32, #tpu.memory_space<vmem>>, vector<8x32xf32>,
    %c6_i32 = arith.constant 6 : i32
    %c8_i32_95 = arith.constant 8 : i32
    %230 = arith.muli %c6_i32, %c8_i32_95 : i32
    %231 = tpu.assume_multiple %230, 8 : i32
    %cst_96 = arith.constant dense<0.000000e+00> : vector<8x32xf32>
    %232 = tpu.matmul %227, %19, %cst_96 {dimension_numbers = #tpu.dot_dimension_numbers<[1], [0], [0], [1], [0, 0, 1, 1], [], []>} : vector<8x32xf32>, vector<32x32xf32>, vector<8x32xf32> -> vector<8x32xf32>
    %cst_97 = arith.constant dense<0.000000e+00> : vector<8x32xf32>
    %233 = tpu.matmul %227, %20, %cst_97 {dimension_numbers = #tpu.dot_dimension_numbers<[1], [0], [0], [1], [0, 0, 1, 1], [], []>} : vector<8x32xf32>, vector<32x32xf32>, vector<8x32xf32> -> vector<8x32xf32>
    %cst_98 = arith.constant dense<0.000000e+00> : vector<8x32xf32>
    %234 = tpu.matmul %227, %21, %cst_98 {dimension_numbers = #tpu.dot_dimension_numbers<[1], [0], [0], [1], [0, 0, 1, 1], [], []>} : vector<8x32xf32>, vector<32x32xf32>, vector<8x32xf32> -> vector<8x32xf32>
    %235 = arith.addf %234, %24 : vector<8x32xf32>
    %236 = arith.index_cast %231 : i32 to index
    %c0_99 = arith.constant 0 : index
    %237 = vector.load %arg15[%236, %c0_99] : memref<64x32xf32, #tpu.memory_space<vmem>>, vector<8x32xf32>
    %238 = arith.addf %237, %232 : vector<8x32xf32>
    %239 = arith.negf %238 : vector<8x32xf32>
    %240 = math.exp %239 : vector<8x32xf32>
    %cst_100 = arith.constant 1.000000e+00 : f32
    %241 = vector.broadcast %cst_100 : f32 to vector<8x32xf32>
    %242 = arith.addf %241, %240 : vector<8x32xf32>
    %243 = arith.divf %241, %242 : vector<8x32xf32>
    %244 = arith.index_cast %231 : i32 to index
    %c0_101 = arith.constant 0 : index
    %245 = vector.load %arg16[%244, %c0_101] : memref<64x32xf32, #tpu.memory_space<vmem>>, vector<8x32xf32>
    %246 = arith.addf %245, %233 : vector<8x32xf32>
    %247 = arith.negf %246 : vector<8x32xf32>
    %248 = math.exp %247 : vector<8x32xf32>
    %cst_102 = arith.constant 1.000000e+00 : f32
    %249 = vector.broadcast %cst_102 : f32 to vector<8x32xf32>
    %250 = arith.addf %249, %248 : vector<8x32xf32>
    %251 = arith.divf %249, %250 : vector<8x32xf32>
    %252 = arith.index_cast %231 : i32 to index
    %c0_103 = arith.constant 0 : index
    %253 = vector.load %arg17[%252, %c0_103] : memref<64x32xf32, #tpu.memory_space<vmem>>, vector<8x32xf32>
    %254 = arith.mulf %243, %235 : vector<8x32xf32>
    %255 = arith.addf %253, %254 : vector<8x32xf32>
    %256 = math.tanh %255 : vector<8x32xf32>
    %cst_104 = arith.constant 1.000000e+00 : f32
    %257 = vector.broadcast %cst_104 : f32 to vector<8x32xf32>
    %258 = arith.subf %257, %251 : vector<8x32xf32>
    %259 = arith.mulf %258, %256 : vector<8x32xf32>
    %260 = arith.mulf %251, %227 : vector<8x32xf32>
    %261 = arith.addf %259, %260 : vector<8x32xf32>
    %262 = arith.index_cast %231 : i32 to index
    %c0_105 = arith.constant 0 : index
    %263 = vector.load %arg18[%262, %c0_105] : memref<64x32xf32, #tpu.memory_space<vmem>>, vector<8x32xf32>
    tpu.vector_store %arg18[%262, %c0_105], %261 {strides = array<i32>} : memref<64x32xf32, #tpu.memory_space<vmem>>, vector<8x32xf32>,
    %c7_i32 = arith.constant 7 : i32
    %c8_i32_106 = arith.constant 8 : i32
    %264 = arith.muli %c7_i32, %c8_i32_106 : i32
    %265 = tpu.assume_multiple %264, 8 : i32
    %cst_107 = arith.constant dense<0.000000e+00> : vector<8x32xf32>
    %266 = tpu.matmul %261, %19, %cst_107 {dimension_numbers = #tpu.dot_dimension_numbers<[1], [0], [0], [1], [0, 0, 1, 1], [], []>} : vector<8x32xf32>, vector<32x32xf32>, vector<8x32xf32> -> vector<8x32xf32>
    %cst_108 = arith.constant dense<0.000000e+00> : vector<8x32xf32>
    %267 = tpu.matmul %261, %20, %cst_108 {dimension_numbers = #tpu.dot_dimension_numbers<[1], [0], [0], [1], [0, 0, 1, 1], [], []>} : vector<8x32xf32>, vector<32x32xf32>, vector<8x32xf32> -> vector<8x32xf32>
    %cst_109 = arith.constant dense<0.000000e+00> : vector<8x32xf32>
    %268 = tpu.matmul %261, %21, %cst_109 {dimension_numbers = #tpu.dot_dimension_numbers<[1], [0], [0], [1], [0, 0, 1, 1], [], []>} : vector<8x32xf32>, vector<32x32xf32>, vector<8x32xf32> -> vector<8x32xf32>
    %269 = arith.addf %268, %24 : vector<8x32xf32>
    %270 = arith.index_cast %265 : i32 to index
    %c0_110 = arith.constant 0 : index
    %271 = vector.load %arg15[%270, %c0_110] : memref<64x32xf32, #tpu.memory_space<vmem>>, vector<8x32xf32>
    %272 = arith.addf %271, %266 : vector<8x32xf32>
    %273 = arith.negf %272 : vector<8x32xf32>
    %274 = math.exp %273 : vector<8x32xf32>
    %cst_111 = arith.constant 1.000000e+00 : f32
    %275 = vector.broadcast %cst_111 : f32 to vector<8x32xf32>
    %276 = arith.addf %275, %274 : vector<8x32xf32>
    %277 = arith.divf %275, %276 : vector<8x32xf32>
    %278 = arith.index_cast %265 : i32 to index
    %c0_112 = arith.constant 0 : index
    %279 = vector.load %arg16[%278, %c0_112] : memref<64x32xf32, #tpu.memory_space<vmem>>, vector<8x32xf32>
    %280 = arith.addf %279, %267 : vector<8x32xf32>
    %281 = arith.negf %280 : vector<8x32xf32>
    %282 = math.exp %281 : vector<8x32xf32>
    %cst_113 = arith.constant 1.000000e+00 : f32
    %283 = vector.broadcast %cst_113 : f32 to vector<8x32xf32>
    %284 = arith.addf %283, %282 : vector<8x32xf32>
    %285 = arith.divf %283, %284 : vector<8x32xf32>
    %286 = arith.index_cast %265 : i32 to index
    %c0_114 = arith.constant 0 : index
    %287 = vector.load %arg17[%286, %c0_114] : memref<64x32xf32, #tpu.memory_space<vmem>>, vector<8x32xf32>
    %288 = arith.mulf %277, %269 : vector<8x32xf32>
    %289 = arith.addf %287, %288 : vector<8x32xf32>
    %290 = math.tanh %289 : vector<8x32xf32>
    %cst_115 = arith.constant 1.000000e+00 : f32
    %291 = vector.broadcast %cst_115 : f32 to vector<8x32xf32>
    %292 = arith.subf %291, %285 : vector<8x32xf32>
    %293 = arith.mulf %292, %290 : vector<8x32xf32>
    %294 = arith.mulf %285, %261 : vector<8x32xf32>
    %295 = arith.addf %293, %294 : vector<8x32xf32>
    %296 = arith.index_cast %265 : i32 to index
    %c0_116 = arith.constant 0 : index
    %297 = vector.load %arg18[%296, %c0_116] : memref<64x32xf32, #tpu.memory_space<vmem>>, vector<8x32xf32>
    tpu.vector_store %arg18[%296, %c0_116], %295 {strides = array<i32>} : memref<64x32xf32, #tpu.memory_space<vmem>>, vector<8x32xf32>,
    %c8_i32_117 = arith.constant 8 : i32
    %c0_118 = arith.constant 0 : index
    %c0_119 = arith.constant 0 : index
    %298 = vector.load %arg18[%c0_118, %c0_119] : memref<64x32xf32, #tpu.memory_space<vmem>>, vector<64x32xf32>
    %c0_120 = arith.constant 0 : index
    %c0_121 = arith.constant 0 : index
    %299 = vector.load %arg12[%c0_120, %c0_121] : memref<32x24xf32, #tpu.memory_space<vmem>>, vector<32x24xf32>
    %cst_122 = arith.constant dense<0.000000e+00> : vector<64x24xf32>
    %300 = tpu.matmul %298, %299, %cst_122 {dimension_numbers = #tpu.dot_dimension_numbers<[1], [0], [0], [1], [0, 0, 1, 1], [], []>} : vector<64x32xf32>, vector<32x24xf32>, vector<64x24xf32> -> vector<64x24xf32>
    %c0_123 = arith.constant 0 : index
    %c0_124 = arith.constant 0 : index
    %301 = vector.load %arg13[%c0_123, %c0_124] : memref<1x24xf32, #tpu.memory_space<vmem>>, vector<1x24xf32>
    %302 = vector.broadcast %301 : vector<1x24xf32> to vector<64x24xf32>
    %303 = arith.addf %300, %302 : vector<64x24xf32>
    %c0_125 = arith.constant 0 : index
    %c0_126 = arith.constant 0 : index
    %304 = vector.load %arg14[%c0_125, %c0_126] : memref<64x24xf32, #tpu.memory_space<vmem>>, vector<64x24xf32>
    tpu.vector_store %arg14[%c0_125, %c0_126], %303 {strides = array<i32>} : memref<64x24xf32, #tpu.memory_space<vmem>>, vector<64x24xf32>,
    return
  }
  func.func @transform_0(%arg0: i32) -> (i32, i32) {
    %c0_i32 = arith.constant 0 : i32
    %c0_i32_0 = arith.constant 0 : i32
    %c0_i32_1 = arith.constant 0 : i32
    return %c0_i32, %c0_i32_0 : i32, i32
  }
  func.func @transform_1(%arg0: i32) -> (i32, i32) {
    %c0_i32 = arith.constant 0 : i32
    %c0_i32_0 = arith.constant 0 : i32
    %c0_i32_1 = arith.constant 0 : i32
    return %c0_i32, %c0_i32_0 : i32, i32
  }
  func.func @transform_2(%arg0: i32) -> (i32, i32) {
    %c0_i32 = arith.constant 0 : i32
    %c0_i32_0 = arith.constant 0 : i32
    %c0_i32_1 = arith.constant 0 : i32
    return %c0_i32, %c0_i32_0 : i32, i32
  }
  func.func @transform_3(%arg0: i32) -> (i32, i32) {
    %c0_i32 = arith.constant 0 : i32
    %c0_i32_0 = arith.constant 0 : i32
    %c0_i32_1 = arith.constant 0 : i32
    return %c0_i32, %c0_i32_0 : i32, i32
  }
  func.func @transform_4(%arg0: i32) -> (i32, i32) {
    %c0_i32 = arith.constant 0 : i32
    %c0_i32_0 = arith.constant 0 : i32
    %c0_i32_1 = arith.constant 0 : i32
    return %c0_i32, %c0_i32_0 : i32, i32
  }
  func.func @transform_5(%arg0: i32) -> (i32, i32) {
    %c0_i32 = arith.constant 0 : i32
    %c0_i32_0 = arith.constant 0 : i32
    %c0_i32_1 = arith.constant 0 : i32
    return %c0_i32, %c0_i32_0 : i32, i32
  }
  func.func @transform_6(%arg0: i32) -> (i32, i32) {
    %c0_i32 = arith.constant 0 : i32
    %c0_i32_0 = arith.constant 0 : i32
    %c0_i32_1 = arith.constant 0 : i32
    return %c0_i32, %c0_i32_0 : i32, i32
  }
  func.func @transform_7(%arg0: i32) -> (i32, i32) {
    %c0_i32 = arith.constant 0 : i32
    %c0_i32_0 = arith.constant 0 : i32
    %c0_i32_1 = arith.constant 0 : i32
    return %c0_i32, %c0_i32_0 : i32, i32
  }
  func.func @transform_8(%arg0: i32) -> (i32, i32) {
    %c0_i32 = arith.constant 0 : i32
    %c0_i32_0 = arith.constant 0 : i32
    %c0_i32_1 = arith.constant 0 : i32
    return %c0_i32, %c0_i32_0 : i32, i32
  }
  func.func @transform_9(%arg0: i32) -> (i32, i32) {
    %c0_i32 = arith.constant 0 : i32
    %c0_i32_0 = arith.constant 0 : i32
    %c0_i32_1 = arith.constant 0 : i32
    return %c0_i32, %c0_i32_0 : i32, i32
  }
  func.func @transform_10(%arg0: i32) -> (i32, i32) {
    %c0_i32 = arith.constant 0 : i32
    %c0_i32_0 = arith.constant 0 : i32
    %c0_i32_1 = arith.constant 0 : i32
    return %c0_i32, %c0_i32_0 : i32, i32
  }
  func.func @transform_11(%arg0: i32) -> (i32, i32) {
    %c0_i32 = arith.constant 0 : i32
    %c0_i32_0 = arith.constant 0 : i32
    %c0_i32_1 = arith.constant 0 : i32
    return %c0_i32, %c0_i32_0 : i32, i32
  }
  func.func @transform_12(%arg0: i32) -> (i32, i32) {
    %c0_i32 = arith.constant 0 : i32
    %c0_i32_0 = arith.constant 0 : i32
    %c0_i32_1 = arith.constant 0 : i32
    return %c0_i32, %c0_i32_0 : i32, i32
  }
  func.func @transform_13(%arg0: i32) -> (i32, i32) {
    %c0_i32 = arith.constant 0 : i32
    %c0_i32_0 = arith.constant 0 : i32
    %c0_i32_1 = arith.constant 0 : i32
    return %c0_i32, %c0_i32_0 : i32, i32
  }
}

</mosaic_0001>

<bundles_post_ra>
// kernel: recovery_forward.1
= control target key start
LH: loop header
LB: loop body
LE: loop exit
PB: predicated region body
PF: predicated region fallthrough
CT: control target
= control target key end

     0   :  { %vm60_vm0 = vcmask 261120   ;;  %v1466_v31 = vmov 0.0   ;;  %s2031_s1 = inlined_call_operand.vmem [shape: f32[32,32], index: 1, kind: input, shape index: {}]   ;;  %s2032_s0 = inlined_call_operand.vmem [shape: f32[64,32], index: 0, kind: input, shape index: {}]   ;;  %s2033_s4 = inlined_call_operand.vmem [shape: f32[32,32], index: 4, kind: input, shape index: {}]   ;;  %s2034_s2 = inlined_call_operand.vmem [shape: f32[32,32], index: 2, kind: input, shape index: {}]   ;;  %s2035_s3 = inlined_call_operand.vmem [shape: f32[32,32], index: 3, kind: input, shape index: {}]   ;;  %s2036_s7 = inlined_call_operand.vmem [shape: f32[1,32], index: 7, kind: input, shape index: {}]   ;;  %s2037_s6 = inlined_call_operand.vmem [shape: f32[32,32], index: 6, kind: input, shape index: {}]   ;;  %s2038_s5 = inlined_call_operand.vmem [shape: f32[32,32], index: 5, kind: input, shape index: {}]   ;;  %s2039_s8 = inlined_call_operand.vmem [shape: f32[1,32], index: 8, kind: input, shape index: {}]   ;;  %s2040_s9 = inlined_call_operand.vmem [shape: f32[1,32], index: 9, kind: input, shape index: {}]   ;;  %s2041_s10 = inlined_call_operand.vmem [shape: f32[1,32], index: 10, kind: input, shape index: {}]   ;;  %s2042_s11 = inlined_call_operand.vmem [shape: f32[32,24], index: 11, kind: input, shape index: {}]   ;;  %s2043_s12 = inlined_call_operand.vmem [shape: f32[1,24], index: 12, kind: input, shape index: {}]   ;;  %s2044_s13 = inlined_call_operand.vmem [shape: f32[64,24], index: 13, kind: output, shape index: {}]  }
   0x1   :  { %v55_v0 = vld [vmem:[%s2031_s1 + $0x18] sm:$0xff]  ;;  %v54_v1 = vld [vmem:[%s2031_s1 + $0x10] sm:$0xff]  ;;  %v53_v2 = vld [vmem:[%s2031_s1 + $0x8] sm:$0xff] }
   0x2   :  { %1369 = vmatpush.msra.mxu3 %v55_v0  ;;  %1367 = vmatpush.msra.mxu1 %v55_v0  ;;  %v52_v3 = vld [vmem:[%s2031_s1] sm:$0xff]  ;;  %v1552_v4 = vld [vmem:[%s2032_s0 + $0x30] sm:$0xff]  ;;  %v1562_v6 = vld [vmem:[%s2033_s4 + $0x18] sm:$0xff] }
   0x3   :  { %97 = vmatpush.msra.mxu0 %v55_v0  ;;  %1368 = vmatpush.msra.mxu2 %v55_v0  ;;  %v1557_v5 = vld [vmem:[%s2032_s0 + $0x10] sm:$0xff]  ;;  %v137_v7 = vld [vmem:[%s2034_s2 + $0x18] sm:$0xff]  ;;  %v44_v10 = vld [vmem:[%s2032_s0] sm:$0xff] }
   0x4   :  { %1372 = vmatpush.msra.mxu3 %v54_v1  ;;  %1370 = vmatpush.msra.mxu1 %v54_v1  ;;  %v1574_v8 = vld [vmem:[%s2033_s4 + $0x10] sm:$0xff]  ;;  %v1586_v11 = vld [vmem:[%s2032_s0 + $0x20] sm:$0xff]  ;;  %v1591_v12 = vld [vmem:[%s2033_s4 + $0x8] sm:$0xff] }
   0x5   :  { %98 = vmatpush.msra.mxu0 %v54_v1  ;;  %1371 = vmatpush.msra.mxu2 %v54_v1  ;;  %v136_v9 = vld [vmem:[%s2034_s2 + $0x10] sm:$0xff]  ;;  %v135_v13 = vld [vmem:[%s2034_s2 + $0x8] sm:$0xff]  ;;  %v194_v14 = vld [vmem:[%s2035_s3 + $0x18] sm:$0xff] }
   0x6   :  { %1375 = vmatpush.msra.mxu3 %v53_v2  ;;  %1373 = vmatpush.msra.mxu1 %v53_v2  ;;  %v1604_v15 = vld [vmem:[%s2033_s4] sm:$0xff]  ;;  %v1614_v17 = vld [vmem:[%s2032_s0 + $0x38] sm:$0xff]  ;;  %v193_v21 = vld [vmem:[%s2035_s3 + $0x10] sm:$0xff] }
   0x7   :  { %99 = vmatpush.msra.mxu0 %v53_v2  ;;  %1374 = vmatpush.msra.mxu2 %v53_v2  ;;  %v134_v16 = vld [vmem:[%s2034_s2] sm:$0xff]  ;;  %v1620_v18 = vld [vmem:[%s2032_s0 + $0x18] sm:$0xff]  ;;  %v1644_v22 = vld [vmem:[%s2038_s5 + $0x10] sm:$0xff] }
   0x8   :  { %1378 = vmatpush.msra.mxu3 %v52_v3  ;;  %1376 = vmatpush.msra.mxu1 %v52_v3  ;;  %v1625_v19 = vld [vmem:[%s2037_s6 + $0x18] sm:$0xff]  ;;  %v192_v23 = vld [vmem:[%s2035_s3 + $0x8] sm:$0xff]  ;;  %v1658_v25 = vld [vmem:[%s2037_s6 + $0x10] sm:$0xff] }
   0x9   :  { %1304 = vmatmul.msk.f32.vlgmr.msra.gmra.mxu3 %vm60_vm0, %v1552_v4  ;;  %1300 = vmatmul.msk.f32.vlgmr.msra.gmra.mxu1 %vm60_vm0, %v1557_v5  ;;  %v1630_v20 = vld [vmem:[%s2038_s5 + $0x18] sm:$0xff]  ;;  %v1653_v24 = vld [vmem:[%s2032_s0 + $0x28] sm:$0xff]  ;;  %v191_v27 = vld [vmem:[%s2035_s3] sm:$0xff] }
   0xa   :  { %279 = vmatpush.msrb.mxu3 %v1562_v6  ;;  %154 = vmatpush.msrb.mxu1 %v137_v7  ;;  %v1663_v26 = vld [vmem:[%s2038_s5 + $0x8] sm:$0xff]  ;;  %v1679_v29 = vld [vmem:[%s2038_s5] sm:$0xff] }
   0xb   :  { %100 = vmatpush.msra.mxu0 %v52_v3  ;;  %1377 = vmatpush.msra.mxu2 %v52_v3  ;;  %v1674_v28 = vld [vmem:[%s2037_s6 + $0x8] sm:$0xff]  ;;  %v1688_v30 = vld [vmem:[%s2037_s6] sm:$0xff] }
   0xc   :  { %280 = vmatpush.msrb.mxu3 %v1574_v8  ;;  %155 = vmatpush.msrb.mxu1 %v136_v9  ;;  %v1728_v32 = vld [vmem:[%s2036_s7] ss:$0 sm:$0xff]  ;;  %v45_v60 = vld [vmem:[%s2032_s0 + $0x8] sm:$0xff] }
   0xd   :  { %1298 = vmatmul.msk.f32.vlgmr.msra.gmra.mxu0 %vm60_vm0, %v44_v10  ;;  %1302 = vmatmul.msk.f32.vlgmr.msra.gmra.mxu2 %vm60_vm0, %v1586_v11  ;;  %v1742_v43 = vld [vmem:[%s2039_s8] ss:$0 sm:$0xff] }
   0xe   :  { %281 = vmatpush.msrb.mxu3 %v1591_v12  ;;  %156 = vmatpush.msrb.mxu1 %v135_v13  ;;  %v1754_v53 = vld [vmem:[%s2040_s9] ss:$0 sm:$0xff] }
   0xf   :  { %211 = vmatpush.msrb.mxu2 %v194_v14  ;;  %551 = vmatpush.msrb.mxu0 %v1625_v19  ;;  %v1771_v7 = vld [vmem:[%s2041_s10] ss:$0 sm:$0xff] }
  0x10   :  { %282 = vmatpush.msrb.mxu3 %v1604_v15  ;;  %157 = vmatpush.msrb.mxu1 %v134_v16 }
  0x11   :  { %1305 = vmatmul.msk.f32.gmra.mxu3 %vm60_vm0, %v1614_v17  ;;  %1301 = vmatmul.msk.f32.gmra.mxu1 %vm60_vm0, %v1620_v18 }
  0x12   :  { %299 = vmatpush.msra.mxu3 %v1630_v20  ;;  %212 = vmatpush.msrb.mxu2 %v193_v21 }
  0x13   :  { %552 = vmatpush.msrb.mxu0 %v1658_v25  ;;  %629 = vmatpush.msra.mxu1 %v1562_v6 }
  0x14   :  { %300 = vmatpush.msra.mxu3 %v1644_v22  ;;  %213 = vmatpush.msrb.mxu2 %v192_v23 }
  0x15   :  { %1303 = vmatmul.msk.f32.gmra.mxu2 %vm60_vm0, %v1653_v24  ;;  %553 = vmatpush.msrb.mxu0 %v1674_v28 }
  0x16   :  { %301 = vmatpush.msra.mxu3 %v1663_v26  ;;  %214 = vmatpush.msrb.mxu2 %v191_v27 }
  0x17   :  { %554 = vmatpush.msrb.mxu0 %v1688_v30  ;;  %630 = vmatpush.msra.mxu1 %v1574_v8 }
  0x18   :  { %649 = vmatpush.msra.mxu2 %v1630_v20  ;;  %302 = vmatpush.msra.mxu3 %v1679_v29 }
  0x19   :  { %283 = vmatmul.f32.vlgmr.msrb.gmra.mxu3 %v1466_v31  ;;  %1306 = vmatmul.msk.f32.vlgmr.msrb.gmra.mxu1 %vm60_vm0, %v44_v10 }
  0x1a   :  { %319 = vmatpush.msrb.mxu3 %v1625_v19  ;;  %650 = vmatpush.msra.mxu2 %v1644_v22 }
  0x1b   :  { %631 = vmatpush.msra.mxu1 %v1591_v12  ;;  %747 = vmatpush.msra.mxu0 %v1562_v6 }
  0x1c   :  { %320 = vmatpush.msrb.mxu3 %v1658_v25  ;;  %651 = vmatpush.msra.mxu2 %v1663_v26 }
  0x1d   :  { %1314 = vmatmul.msk.f32.vlgmr.msrb.gmra.mxu2 %vm60_vm0, %v44_v10  ;;  %632 = vmatpush.msra.mxu1 %v1604_v15 }
  0x1e   :  { %321 = vmatpush.msrb.mxu3 %v1674_v28  ;;  %652 = vmatpush.msra.mxu2 %v1679_v29 }
  0x1f   :  { %767 = vmatpush.msrb.mxu1 %v1630_v20  ;;  %748 = vmatpush.msra.mxu0 %v1574_v8 }
  0x20   :  { %787 = vmatpush.msrb.mxu2 %v1625_v19  ;;  %322 = vmatpush.msrb.mxu3 %v1688_v30 }
  0x21   :  { %303 = vmatmul.f32.vlgmr.msra.gmra.mxu3 %v1466_v31  ;;  %768 = vmatpush.msrb.mxu1 %v1644_v22 }
  0x22   :  { %393 = vmatpush.msra.mxu3 %v1562_v6  ;;  %788 = vmatpush.msrb.mxu2 %v1658_v25 }
  0x23   :  { %749 = vmatpush.msra.mxu0 %v1591_v12  ;;  %769 = vmatpush.msrb.mxu1 %v1663_v26 }
  0x24   :  { %394 = vmatpush.msra.mxu3 %v1574_v8  ;;  %789 = vmatpush.msrb.mxu2 %v1674_v28 }
  0x25   :  { %750 = vmatpush.msra.mxu0 %v1604_v15  ;;  %770 = vmatpush.msrb.mxu1 %v1679_v29 }
  0x26   :  { %395 = vmatpush.msra.mxu3 %v1591_v12  ;;  %790 = vmatpush.msrb.mxu2 %v1688_v30 }
  0x27   :  { %1299 = vmatmul.msk.f32.gmra.mxu0 %vm60_vm0, %v45_v60  ;;  %1307 = vmatmul.msk.f32.gmra.mxu1 %vm60_vm0, %v45_v60 }
  0x28   :  { %396 = vmatpush.msra.mxu3 %v1604_v15  ;;  %1315 = vmatmul.msk.f32.gmra.mxu2 %vm60_vm0, %v45_v60 }
  0x29   :  { %323 = vmatmul.f32.vlgmr.msrb.gmra.mxu3 %v1466_v31 }
  0x2a   :  { %413 = vmatpush.msrb.mxu3 %v1630_v20 }
  0x2c   :  { %414 = vmatpush.msrb.mxu3 %v1644_v22 }
  0x2e   :  { %415 = vmatpush.msrb.mxu3 %v1663_v26 }
  0x2f   :  { %1308 = vmatmul.msk.f32.gmra.mxu1 %vm60_vm0, %v1557_v5 }
  0x30   :  { %416 = vmatpush.msrb.mxu3 %v1679_v29  ;;  %1316 = vmatmul.msk.f32.gmra.mxu2 %vm60_vm0, %v1557_v5 }
  0x37   :  { %1309 = vmatmul.msk.f32.gmra.mxu1 %vm60_vm0, %v1620_v18 }
  0x38   :  { %1317 = vmatmul.msk.f32.gmra.mxu2 %vm60_vm0, %v1620_v18 }
  0x3f   :  { %1310 = vmatmul.msk.f32.gmra.mxu1 %vm60_vm0, %v1586_v11 }
  0x40   :  { %1318 = vmatmul.msk.f32.gmra.mxu2 %vm60_vm0, %v1586_v11 }
  0x47   :  { %1311 = vmatmul.msk.f32.gmra.mxu1 %vm60_vm0, %v1653_v24 }
  0x48   :  { %1319 = vmatmul.msk.f32.gmra.mxu2 %vm60_vm0, %v1653_v24 }
  0x4f   :  { %1312 = vmatmul.msk.f32.gmra.mxu1 %vm60_vm0, %v1552_v4 }
  0x50   :  { %1320 = vmatmul.msk.f32.gmra.mxu2 %vm60_vm0, %v1552_v4 }
  0x57   :  { %1313 = vmatmul.msk.f32.gmra.mxu1 %vm60_vm0, %v1614_v17 }
  0x58   :  { %1321 = vmatmul.msk.f32.gmra.mxu2 %vm60_vm0, %v1614_v17 }
  0x86   :  { %v108_v33 = vpop.f32.mrf.mxu1 }
  0x87   :  { %v109_v34 = vadd.f32 %v1728_v32, %v108_v33 }
  0x89   :  { %128 = vst.msk [vmem:[#allocation2 + $0x10] sm:$0xff] %vm60_vm0, %v109_v34 }
  0x8a   :  { %v102_v35 = vpop.f32.mrf.mxu0 }
  0x8b   :  { %v103_v36 = vadd.f32 %v1728_v32, %v102_v35 }
  0x8c   :  { %v120_v37 = vpop.f32.mrf.mxu3 }
  0x8d   :  { %v121_v38 = vadd.f32 %v1728_v32, %v120_v37  ;;  %126 = vst.msk [vmem:[#allocation2] sm:$0xff] %vm60_vm0, %v103_v36 }
  0x8e   :  { %v111_v39 = vpop.f32.mrf.mxu1 }
  0x8f   :  { %132 = vst.msk [vmem:[#allocation2 + $0x30] sm:$0xff] %vm60_vm0, %v121_v38  ;;  %v112_v40 = vadd.f32 %v1728_v32, %v111_v39 }
  0x90   :  { %v114_v41 = vpop.f32.mrf.mxu2 }
  0x91   :  { %129 = vst.msk [vmem:[#allocation2 + $0x18] sm:$0xff] %vm60_vm0, %v112_v40  ;;  %v115_v42 = vadd.f32 %v1728_v32, %v114_v41 }
  0x93   :  { %130 = vst.msk [vmem:[#allocation2 + $0x20] sm:$0xff] %vm60_vm0, %v115_v42 }
  0x94   :  { %v123_v44 = vpop.f32.mrf.mxu3  ;;  %v327_v50 = vld [vmem:[#allocation2] sm:$0xff] }
  0x95   :  { %v124_v45 = vadd.f32 %v1728_v32, %v123_v44 }
  0x96   :  { %v159_v46 = vpop.f32.mrf.mxu1 }
  0x97   :  { %133 = vst.msk [vmem:[#allocation2 + $0x38] sm:$0xff] %vm60_vm0, %v124_v45  ;;  %v160_v47 = vadd.f32 %v1742_v43, %v159_v46 }
  0x98   :  { %v117_v48 = vpop.f32.mrf.mxu2 }
  0x99   :  { %183 = vst.msk [vmem:[#allocation3] sm:$0xff] %vm60_vm0, %v160_v47  ;;  %v118_v49 = vadd.f32 %v1728_v32, %v117_v48 }
  0x9b   :  { %131 = vst.msk [vmem:[#allocation2 + $0x28] sm:$0xff] %vm60_vm0, %v118_v49 }
  0x9c   :  { %v284_v51 = vpop.f32.mrf.mxu3 }
  0x9d   :  { %v328_v52 = vadd.f32 %v327_v50, %v284_v51 }
  0x9f   :  { %v1322_v54 = vmul.f32 -1.442695, %v328_v52 }
  0xa0   :  { %v216_v55 = vpop.f32.mrf.mxu2  ;;  %v348_v57 = vld [vmem:[#allocation3] sm:$0xff] }
  0xa1   :  { %1385 = vpow2.f32 %v1322_v54  ;;  %v217_v56 = vadd.f32 %v1754_v53, %v216_v55 }
  0xa3   :  { %240 = vst.msk [vmem:[#allocation4] sm:$0xff] %vm60_vm0, %v217_v56 }
  0xa4   :  { %v304_v58 = vpop.f32.mrf.mxu3  ;;  %v105_v4 = vpop.f32.mrf.mxu0 }
  0xa5   :  { %v349_v59 = vadd.f32 %v348_v57, %v304_v58  ;;  %v162_v11 = vpop.f32.mrf.mxu1  ;;  %v106_v24 = vadd.f32 %v1728_v32, %v105_v4 }
  0xa6   :  { %v163_v51 = vadd.f32 %v1742_v43, %v162_v11 }
  0xa7   :  { %v1386_v61 = vpop.eup %1385  ;;  %v1323_v62 = vmul.f32 -1.442695, %v349_v59  ;;  %127 = vst.msk [vmem:[#allocation2 + $0x8] sm:$0xff] %vm60_vm0, %v106_v24 }
  0xa8   :  { %v332_v63 = vadd.f32 1.0, %v1386_v61  ;;  %184 = vst.msk [vmem:[#allocation3 + $0x8] sm:$0xff] %vm60_vm0, %v163_v51 }
  0xa9   :  { %1387 = vpow2.f32 %v1323_v62 }
  0xaa   :  { %1389 = vrcp.f32 %v332_v63  ;;  %v344_v13 = vand.u32 2147483648, %v332_v63  ;;  %v342_v16 = vand.u32 2147483647, %v332_v63  ;;  %vm338_vm2 = vweird.f32 %v332_v63  ;;  %v369_v35 = vld [vmem:[#allocation4] sm:$0xff] }
  0xab   :  { %v219_v17 = vpop.f32.mrf.mxu2 }
  0xac   :  { %v324_v10 = vpop.f32.mrf.mxu3  ;;  %v345_v27 = vor.u32 1.1754944e-38, %v344_v13  ;;  %vm343_vm4 = vcmp.eq.f32.partialorder %v342_v16, 8.507059e+37  ;;  %v220_v52 = vadd.f32 %v1754_v53, %v219_v17  ;;  %v560_v17 = vld [vmem:[#allocation2 + $0x10] sm:$0xff] }
  0xad   :  { %v325_v5 = vadd.f32 %v1771_v7, %v324_v10 }
  0xae   :  { %241 = vst.msk [vmem:[#allocation4 + $0x8] sm:$0xff] %vm60_vm0, %v220_v52  ;;  %v442_v54 = vld [vmem:[#allocation2 + $0x8] sm:$0xff] }
  0xaf   :  { %v1388_v0 = vpop.eup %1387  ;;  %v464_v58 = vld [vmem:[#allocation3 + $0x8] sm:$0xff] }
  0xb0   :  { %v1390_v1 = vpop.eup %1389  ;;  %v353_v2 = vadd.f32 1.0, %v1388_v0 }
  0xb1   :  { %v334_v3 = vmul.f32 %v1390_v1, %v332_v63  ;;  %vm339_vm1 = vweird.f32 %v1390_v1 }
  0xb2   :  { %1391 = vrcp.f32 %v353_v2  ;;  %vm340_vm3 = vmor %vm338_vm2, %vm339_vm1  ;;  %v365_v38 = vand.u32 2147483648, %v353_v2  ;;  %v363_v40 = vand.u32 2147483647, %v353_v2  ;;  %vm359_vm6 = vweird.f32 %v353_v2 }
  0xb3   :  { %v335_v9 = vsub.f32 1.0, %v334_v3  ;;  %v222_v11 = vpop.f32.mrf.mxu2 }
  0xb4   :  { %v366_v18 = vor.u32 1.1754944e-38, %v365_v38  ;;  %vm364_vm8 = vcmp.eq.f32.partialorder %v363_v40, 8.507059e+37  ;;  %v223_v24 = vadd.f32 %v1754_v53, %v222_v11 }
  0xb5   :  { %v336_v14 = vmul.f32 %v1390_v1, %v335_v9 }
  0xb6   :  { %242 = vst.msk [vmem:[#allocation4 + $0x10] sm:$0xff] %vm60_vm0, %v223_v24 }
  0xb7   :  { %v337_v21 = vadd.f32 %v1390_v1, %v336_v14 }
  0xb8   :  { %v1392_v23 = vpop.eup %1391 }
  0xb9   :  { %v355_v31 = vmul.f32 %v1392_v23, %v353_v2  ;;  %v341_v33 = vsel %vm340_vm3, %v1390_v1, %v337_v21  ;;  %vm360_vm5 = vweird.f32 %v1392_v23 }
  0xba   :  { %v346_v34 = vsel %vm343_vm4, %v345_v27, %v341_v33  ;;  %vm361_vm7 = vmor %vm359_vm6, %vm360_vm5 }
  0xbb   :  { %v356_v36 = vsub.f32 1.0, %v355_v31  ;;  %v370_v37 = vmul.f32 %v346_v34, %v325_v5  ;;  %v486_v34 = vld [vmem:[#allocation4 + $0x8] sm:$0xff] }
  0xbd   :  { %v357_v39 = vmul.f32 %v1392_v23, %v356_v36  ;;  %v371_v41 = vadd.f32 %v370_v37, %v369_v35 }
  0xbf   :  { %v358_v42 = vadd.f32 %v1392_v23, %v357_v39  ;;  %1393 = vtanh.f32 %v371_v41 }
  0xc1   :  { %v362_v44 = vsel %vm361_vm7, %v1392_v23, %v358_v42 }
  0xc2   :  { %v367_v45 = vsel %vm364_vm8, %v366_v18, %v362_v44 }
  0xc3   :  { %v373_v46 = vsub.f32 1.0, %v367_v45  ;;  %v375_v49 = vmul.f32 0.0, %v367_v45 }
  0xc5   :  { %v1394_v47 = vpop.eup %1393 }
  0xc6   :  { %v374_v48 = vmul.f32 %v1394_v47, %v373_v46 }
  0xc8   :  { %v1786_v50 = vadd.f32 %v375_v49, %v374_v48 }
  0xca   :  { %377 = vst.msk [vmem:[#allocation5] sm:$0xff] %vm60_vm0, %v1786_v50  ;;  %1324 = vmatmul.msk.f32.vlgmr.msra.gmra.mxu3 %vm60_vm0, %v1786_v50 }
  0xcb   :  { %433 = vmatpush.msra.mxu3 %v1625_v19 }
  0xcd   :  { %434 = vmatpush.msra.mxu3 %v1658_v25 }
  0xcf   :  { %435 = vmatpush.msra.mxu3 %v1674_v28 }
  0xd1   :  { %436 = vmatpush.msra.mxu3 %v1688_v30 }
  0xd2   :  { %1325 = vmatmul.msk.f32.vlgmr.msrb.gmra.mxu3 %vm60_vm0, %v1786_v50 }
  0xd3   :  { %511 = vmatpush.msrb.mxu3 %v1562_v6 }
  0xd5   :  { %512 = vmatpush.msrb.mxu3 %v1574_v8 }
  0xd7   :  { %513 = vmatpush.msrb.mxu3 %v1591_v12 }
  0xd9   :  { %514 = vmatpush.msrb.mxu3 %v1604_v15 }
  0xda   :  { %1326 = vmatmul.msk.f32.vlgmr.msra.gmra.mxu3 %vm60_vm0, %v1786_v50 }
  0xdb   :  { %531 = vmatpush.msra.mxu3 %v1630_v20 }
  0xdd   :  { %532 = vmatpush.msra.mxu3 %v1644_v22 }
  0xdf   :  { %533 = vmatpush.msra.mxu3 %v1663_v26 }
  0xe1   :  { %534 = vmatpush.msra.mxu3 %v1679_v29 }
 0x14d   :  { %v398_v55 = vpop.f32.mrf.mxu3 }
 0x14e   :  { %v443_v56 = vadd.f32 %v442_v54, %v398_v55 }
 0x150   :  { %v1327_v57 = vmul.f32 -1.442695, %v443_v56 }
 0x152   :  { %1395 = vpow2.f32 %v1327_v57 }
 0x155   :  { %v418_v59 = vpop.f32.mrf.mxu3 }
 0x156   :  { %v465_v60 = vadd.f32 %v464_v58, %v418_v59 }
 0x158   :  { %v1396_v32 = vpop.eup %1395  ;;  %v1328_v61 = vmul.f32 -1.442695, %v465_v60 }
 0x159   :  { %v447_v62 = vadd.f32 1.0, %v1396_v32 }
 0x15a   :  { %1397 = vpow2.f32 %v1328_v61  ;;  %v225_v61 = vpop.f32.mrf.mxu2 }
 0x15b   :  { %1399 = vrcp.f32 %v447_v62  ;;  %v459_v9 = vand.u32 2147483648, %v447_v62  ;;  %v457_v13 = vand.u32 2147483647, %v447_v62  ;;  %vm453_vm10 = vweird.f32 %v447_v62 }
 0x15d   :  { %v438_v14 = vpop.f32.mrf.mxu3  ;;  %v460_v21 = vor.u32 1.1754944e-38, %v459_v9  ;;  %vm458_vm12 = vcmp.eq.f32.partialorder %v457_v13, 8.507059e+37 }
 0x15e   :  { %v439_v27 = vadd.f32 %v1771_v7, %v438_v14 }
 0x160   :  { %v1398_v63 = vpop.eup %1397 }
 0x161   :  { %v1400_v0 = vpop.eup %1399  ;;  %v469_v1 = vadd.f32 1.0, %v1398_v63  ;;  %v226_v63 = vadd.f32 %v1754_v53, %v225_v61 }
 0x162   :  { %v449_v2 = vmul.f32 %v1400_v0, %v447_v62  ;;  %vm454_vm9 = vweird.f32 %v1400_v0  ;;  %v228_v13 = vpop.f32.mrf.mxu2 }
 0x163   :  { %1401 = vrcp.f32 %v469_v1  ;;  %vm455_vm11 = vmor %vm453_vm10, %vm454_vm9  ;;  %v481_v37 = vand.u32 2147483648, %v469_v1  ;;  %v479_v39 = vand.u32 2147483647, %v469_v1  ;;  %vm475_vm14 = vweird.f32 %v469_v1  ;;  %243 = vst.msk [vmem:[#allocation4 + $0x18] sm:$0xff] %vm60_vm0, %v226_v63 }
 0x164   :  { %v450_v3 = vsub.f32 1.0, %v449_v2 }
 0x165   :  { %v482_v42 = vor.u32 1.1754944e-38, %v481_v37  ;;  %vm480_vm1 = vcmp.eq.f32.partialorder %v479_v39, 8.507059e+37  ;;  %v604_v39 = vld [vmem:[#allocation4 + $0x10] sm:$0xff] }
 0x166   :  { %v451_v10 = vmul.f32 %v1400_v0, %v450_v3 }
 0x168   :  { %v452_v16 = vadd.f32 %v1400_v0, %v451_v10 }
 0x169   :  { %v1402_v5 = vpop.eup %1401 }
 0x16a   :  { %v471_v23 = vmul.f32 %v1402_v5, %v469_v1  ;;  %v456_v31 = vsel %vm455_vm11, %v1400_v0, %v452_v16  ;;  %vm476_vm13 = vweird.f32 %v1402_v5 }
 0x16b   :  { %v461_v33 = vsel %vm458_vm12, %v460_v21, %v456_v31  ;;  %vm477_vm15 = vmor %vm475_vm14, %vm476_vm13 }
 0x16c   :  { %v472_v35 = vsub.f32 1.0, %v471_v23  ;;  %v487_v36 = vmul.f32 %v461_v33, %v439_v27 }
 0x16e   :  { %v473_v38 = vmul.f32 %v1402_v5, %v472_v35  ;;  %v488_v40 = vadd.f32 %v487_v36, %v486_v34 }
 0x170   :  { %v474_v41 = vadd.f32 %v1402_v5, %v473_v38  ;;  %1403 = vtanh.f32 %v488_v40 }
 0x172   :  { %v478_v18 = vsel %vm477_vm15, %v1402_v5, %v474_v41  ;;  %v229_v5 = vadd.f32 %v1754_v53, %v228_v13 }
 0x173   :  { %v483_v44 = vsel %vm480_vm1, %v482_v42, %v478_v18  ;;  %v231_v18 = vpop.f32.mrf.mxu2 }
 0x174   :  { %v490_v45 = vsub.f32 1.0, %v483_v44  ;;  %v492_v48 = vmul.f32 %v483_v44, %v1786_v50  ;;  %v165_v50 = vpop.f32.mrf.mxu1  ;;  %244 = vst.msk [vmem:[#allocation4 + $0x20] sm:$0xff] %vm60_vm0, %v229_v5 }
 0x175   :  { %v166_v4 = vadd.f32 %v1742_v43, %v165_v50 }
 0x176   :  { %v1404_v46 = vpop.eup %1403 }
 0x177   :  { %v491_v47 = vmul.f32 %v1404_v46, %v490_v45  ;;  %185 = vst.msk [vmem:[#allocation3 + $0x10] sm:$0xff] %vm60_vm0, %v166_v4  ;;  %v232_v46 = vadd.f32 %v1754_v53, %v231_v18 }
 0x179   :  { %v1824_v49 = vadd.f32 %v492_v48, %v491_v47  ;;  %245 = vst.msk [vmem:[#allocation4 + $0x28] sm:$0xff] %vm60_vm0, %v232_v46 }
 0x17b   :  { %495 = vst.msk [vmem:[#allocation5 + $0x8] sm:$0xff] %vm60_vm0, %v1824_v49  ;;  %1329 = vmatmul.msk.f32.vlgmr.msrb.gmra.mxu3 %vm60_vm0, %v1824_v49  ;;  %1331 = vmatmul.msk.f32.vlgmr.msrb.gmra.mxu0 %vm60_vm0, %v1824_v49 }
 0x17c   :  { %669 = vmatpush.msrb.mxu3 %v1625_v19  ;;  %885 = vmatpush.msrb.mxu0 %v1630_v20  ;;  %v168_v32 = vpop.f32.mrf.mxu1 }
 0x17d   :  { %v169_v62 = vadd.f32 %v1742_v43, %v168_v32 }
 0x17e   :  { %670 = vmatpush.msrb.mxu3 %v1658_v25  ;;  %886 = vmatpush.msrb.mxu0 %v1644_v22  ;;  %v582_v55 = vld [vmem:[#allocation3 + $0x10] sm:$0xff] }
 0x17f   :  { %186 = vst.msk [vmem:[#allocation3 + $0x18] sm:$0xff] %vm60_vm0, %v169_v62 }
 0x180   :  { %671 = vmatpush.msrb.mxu3 %v1674_v28  ;;  %887 = vmatpush.msrb.mxu0 %v1663_v26 }
 0x182   :  { %672 = vmatpush.msrb.mxu3 %v1688_v30  ;;  %888 = vmatpush.msrb.mxu0 %v1679_v29 }
 0x183   :  { %1330 = vmatmul.msk.f32.vlgmr.msra.gmra.mxu3 %vm60_vm0, %v1824_v49 }
 0x184   :  { %865 = vmatpush.msra.mxu3 %v1562_v6  ;;  %v171_v10 = vpop.f32.mrf.mxu1 }
 0x185   :  { %v172_v16 = vadd.f32 %v1742_v43, %v171_v10 }
 0x186   :  { %866 = vmatpush.msra.mxu3 %v1574_v8 }
 0x187   :  { %187 = vst.msk [vmem:[#allocation3 + $0x20] sm:$0xff] %vm60_vm0, %v172_v16 }
 0x188   :  { %867 = vmatpush.msra.mxu3 %v1591_v12 }
 0x18a   :  { %868 = vmatpush.msra.mxu3 %v1604_v15 }
 0x18c   :  { %v174_v42 = vpop.f32.mrf.mxu1 }
 0x18d   :  { %v175_v45 = vadd.f32 %v1742_v43, %v174_v42 }
 0x18f   :  { %188 = vst.msk [vmem:[#allocation3 + $0x28] sm:$0xff] %vm60_vm0, %v175_v45 }
 0x1f8   :  { %v556_v27 = vpop.f32.mrf.mxu0 }
 0x1f9   :  { %v557_v35 = vadd.f32 %v1771_v7, %v556_v27 }
 0x1fe   :  { %v516_v51 = vpop.f32.mrf.mxu3 }
 0x1ff   :  { %v561_v52 = vadd.f32 %v560_v17, %v516_v51 }
 0x201   :  { %v1332_v54 = vmul.f32 -1.442695, %v561_v52  ;;  %v177_v52 = vpop.f32.mrf.mxu1 }
 0x203   :  { %1405 = vpow2.f32 %v1332_v54  ;;  %v234_v54 = vpop.f32.mrf.mxu2 }
 0x206   :  { %v536_v56 = vpop.f32.mrf.mxu3 }
 0x207   :  { %v583_v57 = vadd.f32 %v582_v55, %v536_v56  ;;  %v178_v55 = vadd.f32 %v1742_v43, %v177_v52  ;;  %v235_v56 = vadd.f32 %v1754_v53, %v234_v54 }
 0x209   :  { %v1406_v58 = vpop.eup %1405  ;;  %v1333_v59 = vmul.f32 -1.442695, %v583_v57  ;;  %189 = vst.msk [vmem:[#allocation3 + $0x30] sm:$0xff] %vm60_vm0, %v178_v55  ;;  %v180_v32 = vpop.f32.mrf.mxu1 }
 0x20a   :  { %v565_v60 = vadd.f32 1.0, %v1406_v58  ;;  %246 = vst.msk [vmem:[#allocation4 + $0x30] sm:$0xff] %vm60_vm0, %v235_v56  ;;  %v181_v61 = vadd.f32 %v1742_v43, %v180_v32 }
 0x20b   :  { %1407 = vpow2.f32 %v1333_v59 }
 0x20c   :  { %1409 = vrcp.f32 %v565_v60  ;;  %v577_v14 = vand.u32 2147483648, %v565_v60  ;;  %v575_v23 = vand.u32 2147483647, %v565_v60  ;;  %vm571_vm3 = vweird.f32 %v565_v60  ;;  %190 = vst.msk [vmem:[#allocation3 + $0x38] sm:$0xff] %vm60_vm0, %v181_v61 }
 0x20e   :  { %v578_v34 = vor.u32 1.1754944e-38, %v577_v14  ;;  %vm576_vm5 = vcmp.eq.f32.partialorder %v575_v23, 8.507059e+37 }
 0x211   :  { %v1408_v0 = vpop.eup %1407 }
 0x212   :  { %v1410_v1 = vpop.eup %1409  ;;  %v587_v2 = vadd.f32 1.0, %v1408_v0 }
 0x213   :  { %v567_v3 = vmul.f32 %v1410_v1, %v565_v60  ;;  %vm572_vm2 = vweird.f32 %v1410_v1 }
 0x214   :  { %1411 = vrcp.f32 %v587_v2  ;;  %vm573_vm4 = vmor %vm571_vm3, %vm572_vm2  ;;  %v599_v44 = vand.u32 2147483648, %v587_v2  ;;  %v597_v48 = vand.u32 2147483647, %v587_v2  ;;  %vm593_vm7 = vweird.f32 %v587_v2 }
 0x215   :  { %v568_v9 = vsub.f32 1.0, %v567_v3 }
 0x216   :  { %v600_v11 = vor.u32 1.1754944e-38, %v599_v44  ;;  %vm598_vm9 = vcmp.eq.f32.partialorder %v597_v48, 8.507059e+37 }
 0x217   :  { %v569_v21 = vmul.f32 %v1410_v1, %v568_v9 }
 0x219   :  { %v570_v31 = vadd.f32 %v1410_v1, %v569_v21 }
 0x21a   :  { %v1412_v33 = vpop.eup %1411 }
 0x21b   :  { %v574_v36 = vsel %vm573_vm4, %v1410_v1, %v570_v31  ;;  %v589_v37 = vmul.f32 %v1412_v33, %v587_v2  ;;  %vm594_vm6 = vweird.f32 %v1412_v33  ;;  %v700_v2 = vld [vmem:[#allocation3 + $0x18] sm:$0xff] }
 0x21c   :  { %v579_v38 = vsel %vm576_vm5, %v578_v34, %v574_v36  ;;  %vm595_vm8 = vmor %vm593_vm7, %vm594_vm6 }
 0x21d   :  { %v605_v40 = vmul.f32 %v579_v38, %v557_v35  ;;  %v590_v41 = vsub.f32 1.0, %v589_v37 }
 0x21f   :  { %v591_v47 = vmul.f32 %v1412_v33, %v590_v41  ;;  %v606_v50 = vadd.f32 %v605_v40, %v604_v39 }
 0x221   :  { %v592_v4 = vadd.f32 %v1412_v33, %v591_v47  ;;  %1413 = vtanh.f32 %v606_v50  ;;  %v722_v47 = vld [vmem:[#allocation4 + $0x18] sm:$0xff] }
 0x223   :  { %v596_v24 = vsel %vm595_vm8, %v1412_v33, %v592_v4 }
 0x224   :  { %v601_v51 = vsel %vm598_vm9, %v600_v11, %v596_v24 }
 0x225   :  { %v608_v17 = vsub.f32 1.0, %v601_v51  ;;  %v610_v59 = vmul.f32 %v601_v51, %v1824_v49  ;;  %v237_v49 = vpop.f32.mrf.mxu2 }
 0x226   :  { %v238_v62 = vadd.f32 %v1754_v53, %v237_v49  ;;  %v678_v53 = vld [vmem:[#allocation2 + $0x18] sm:$0xff] }
 0x227   :  { %v1414_v57 = vpop.eup %1413 }
 0x228   :  { %v609_v58 = vmul.f32 %v1414_v57, %v608_v17  ;;  %247 = vst.msk [vmem:[#allocation4 + $0x38] sm:$0xff] %vm60_vm0, %v238_v62  ;;  %v818_v57 = vld [vmem:[#allocation3 + $0x20] sm:$0xff] }
 0x22a   :  { %v1868_v60 = vadd.f32 %v610_v59, %v609_v58 }
 0x22c   :  { %613 = vst.msk [vmem:[#allocation5 + $0x10] sm:$0xff] %vm60_vm0, %v1868_v60  ;;  %1334 = vmatmul.msk.f32.vlgmr.msra.gmra.mxu1 %vm60_vm0, %v1868_v60  ;;  %1335 = vmatmul.msk.f32.vlgmr.msra.gmra.mxu2 %vm60_vm0, %v1868_v60 }
 0x22d   :  { %1336 = vmatmul.msk.f32.vlgmr.msrb.gmra.mxu3 %vm60_vm0, %v1868_v60  ;;  %905 = vmatpush.msra.mxu1 %v1625_v19 }
 0x22e   :  { %983 = vmatpush.msra.mxu2 %v1562_v6  ;;  %1003 = vmatpush.msrb.mxu3 %v1630_v20 }
 0x22f   :  { %906 = vmatpush.msra.mxu1 %v1658_v25 }
 0x230   :  { %984 = vmatpush.msra.mxu2 %v1574_v8  ;;  %1004 = vmatpush.msrb.mxu3 %v1644_v22 }
 0x231   :  { %907 = vmatpush.msra.mxu1 %v1674_v28 }
 0x232   :  { %985 = vmatpush.msra.mxu2 %v1591_v12  ;;  %1005 = vmatpush.msrb.mxu3 %v1663_v26 }
 0x233   :  { %908 = vmatpush.msra.mxu1 %v1688_v30 }
 0x234   :  { %986 = vmatpush.msra.mxu2 %v1604_v15  ;;  %1006 = vmatpush.msrb.mxu3 %v1679_v29 }
 0x2a9   :  { %v634_v43 = vpop.f32.mrf.mxu1 }
 0x2aa   :  { %v679_v63 = vadd.f32 %v678_v53, %v634_v43 }
 0x2ac   :  { %v1337_v0 = vmul.f32 -1.442695, %v679_v63 }
 0x2ae   :  { %1415 = vpow2.f32 %v1337_v0 }
 0x2af   :  { %v654_v1 = vpop.f32.mrf.mxu2 }
 0x2b0   :  { %v701_v3 = vadd.f32 %v700_v2, %v654_v1  ;;  %v674_v35 = vpop.f32.mrf.mxu3 }
 0x2b1   :  { %v675_v40 = vadd.f32 %v1771_v7, %v674_v35 }
 0x2b2   :  { %v1338_v9 = vmul.f32 -1.442695, %v701_v3 }
 0x2b4   :  { %v1416_v10 = vpop.eup %1415  ;;  %1417 = vpow2.f32 %v1338_v9 }
 0x2b5   :  { %v683_v13 = vadd.f32 1.0, %v1416_v10 }
 0x2b7   :  { %1419 = vrcp.f32 %v683_v13  ;;  %v695_v27 = vand.u32 2147483648, %v683_v13  ;;  %v693_v33 = vand.u32 2147483647, %v683_v13  ;;  %vm689_vm11 = vweird.f32 %v683_v13 }
 0x2b9   :  { %v696_v38 = vor.u32 1.1754944e-38, %v695_v27  ;;  %vm694_vm13 = vcmp.eq.f32.partialorder %v693_v33, 8.507059e+37  ;;  %v840_v27 = vld [vmem:[#allocation4 + $0x20] sm:$0xff] }
 0x2ba   :  { %v1418_v14 = vpop.eup %1417 }
 0x2bb   :  { %v705_v16 = vadd.f32 1.0, %v1418_v14 }
 0x2bd   :  { %v1420_v5 = vpop.eup %1419  ;;  %1421 = vrcp.f32 %v705_v16  ;;  %v717_v44 = vand.u32 2147483648, %v705_v16  ;;  %v715_v46 = vand.u32 2147483647, %v705_v16  ;;  %vm711_vm15 = vweird.f32 %v705_v16 }
 0x2be   :  { %v685_v21 = vmul.f32 %v1420_v5, %v683_v13  ;;  %vm690_vm10 = vweird.f32 %v1420_v5 }
 0x2bf   :  { %vm691_vm12 = vmor %vm689_vm11, %vm690_vm10  ;;  %v718_v4 = vor.u32 1.1754944e-38, %v717_v44  ;;  %vm716_vm2 = vcmp.eq.f32.partialorder %v715_v46, 8.507059e+37  ;;  %v914_v46 = vld [vmem:[#allocation2 + $0x28] sm:$0xff] }
 0x2c0   :  { %v686_v23 = vsub.f32 1.0, %v685_v21 }
 0x2c2   :  { %v687_v31 = vmul.f32 %v1420_v5, %v686_v23 }
 0x2c3   :  { %v1422_v34 = vpop.eup %1421 }
 0x2c4   :  { %v707_v36 = vmul.f32 %v1422_v34, %v705_v16  ;;  %v688_v37 = vadd.f32 %v1420_v5, %v687_v31  ;;  %vm712_vm14 = vweird.f32 %v1422_v34 }
 0x2c5   :  { %vm713_vm1 = vmor %vm711_vm15, %vm712_vm14 }
 0x2c6   :  { %v708_v39 = vsub.f32 1.0, %v707_v36  ;;  %v692_v41 = vsel %vm691_vm12, %v1420_v5, %v688_v37 }
 0x2c7   :  { %v697_v42 = vsel %vm694_vm13, %v696_v38, %v692_v41 }
 0x2c8   :  { %v709_v18 = vmul.f32 %v1422_v34, %v708_v39  ;;  %v723_v45 = vmul.f32 %v697_v42, %v675_v40  ;;  %v936_v42 = vld [vmem:[#allocation3 + $0x28] sm:$0xff] }
 0x2ca   :  { %v710_v48 = vadd.f32 %v1422_v34, %v709_v18  ;;  %v724_v50 = vadd.f32 %v723_v45, %v722_v47 }
 0x2cc   :  { %v714_v11 = vsel %vm713_vm1, %v1422_v34, %v710_v48  ;;  %1423 = vtanh.f32 %v724_v50 }
 0x2cd   :  { %v719_v24 = vsel %vm716_vm2, %v718_v4, %v714_v11 }
 0x2ce   :  { %v726_v51 = vsub.f32 1.0, %v719_v24  ;;  %v728_v54 = vmul.f32 %v719_v24, %v1868_v60  ;;  %v1213_v24 = vld [vmem:[%s2042_s11 + $0x8] sm:$0xff] }
 0x2d2   :  { %v1424_v17 = vpop.eup %1423 }
 0x2d3   :  { %v727_v52 = vmul.f32 %v1424_v17, %v726_v51  ;;  %v1212_v17 = vld [vmem:[%s2042_s11] sm:$0xff] }
 0x2d5   :  { %v1896_v55 = vadd.f32 %v728_v54, %v727_v52 }
 0x2d7   :  { %731 = vst.msk [vmem:[#allocation5 + $0x18] sm:$0xff] %vm60_vm0, %v1896_v55  ;;  %1339 = vmatmul.msk.f32.vlgmr.msra.gmra.mxu0 %vm60_vm0, %v1896_v55  ;;  %1340 = vmatmul.msk.f32.vlgmr.msrb.gmra.mxu1 %vm60_vm0, %v1896_v55 }
 0x2d8   :  { %1341 = vmatmul.msk.f32.vlgmr.msrb.gmra.mxu2 %vm60_vm0, %v1896_v55  ;;  %1023 = vmatpush.msra.mxu0 %v1625_v19 }
 0x2d9   :  { %1101 = vmatpush.msrb.mxu1 %v1562_v6  ;;  %1121 = vmatpush.msrb.mxu2 %v1630_v20  ;;  %v796_v20 = vld [vmem:[#allocation2 + $0x20] sm:$0xff] }
 0x2da   :  { %1024 = vmatpush.msra.mxu0 %v1658_v25 }
 0x2db   :  { %1102 = vmatpush.msrb.mxu1 %v1574_v8  ;;  %1122 = vmatpush.msrb.mxu2 %v1644_v22 }
 0x2dc   :  { %1025 = vmatpush.msra.mxu0 %v1674_v28 }
 0x2dd   :  { %1103 = vmatpush.msrb.mxu1 %v1591_v12  ;;  %1123 = vmatpush.msrb.mxu2 %v1663_v26 }
 0x2de   :  { %1026 = vmatpush.msra.mxu0 %v1688_v30 }
 0x2df   :  { %1104 = vmatpush.msrb.mxu1 %v1604_v15  ;;  %1124 = vmatpush.msrb.mxu2 %v1679_v29 }
 0x354   :  { %v752_v6 = vpop.f32.mrf.mxu0  ;;  %v772_v56 = vpop.f32.mrf.mxu1 }
 0x355   :  { %v797_v58 = vadd.f32 %v796_v20, %v752_v6  ;;  %v819_v8 = vadd.f32 %v818_v57, %v772_v56 }
 0x357   :  { %v1342_v59 = vmul.f32 -1.442695, %v797_v58  ;;  %v1343_v22 = vmul.f32 -1.442695, %v819_v8 }
 0x359   :  { %1425 = vpow2.f32 %v1342_v59 }
 0x35a   :  { %1427 = vpow2.f32 %v1343_v22 }
 0x35b   :  { %v792_v2 = vpop.f32.mrf.mxu2 }
 0x35c   :  { %v793_v10 = vadd.f32 %v1771_v7, %v792_v2 }
 0x35f   :  { %v1426_v60 = vpop.eup %1425 }
 0x360   :  { %v1428_v12 = vpop.eup %1427  ;;  %v801_v32 = vadd.f32 1.0, %v1426_v60 }
 0x361   :  { %v823_v26 = vadd.f32 1.0, %v1428_v12 }
 0x362   :  { %1429 = vrcp.f32 %v801_v32  ;;  %v813_v53 = vand.u32 2147483648, %v801_v32  ;;  %v811_v0 = vand.u32 2147483647, %v801_v32  ;;  %vm807_vm4 = vweird.f32 %v801_v32 }
 0x363   :  { %1431 = vrcp.f32 %v823_v26  ;;  %v835_v5 = vand.u32 2147483648, %v823_v26  ;;  %vm829_vm8 = vweird.f32 %v823_v26  ;;  %v833_v23 = vand.u32 2147483647, %v823_v26 }
 0x364   :  { %v814_v9 = vor.u32 1.1754944e-38, %v813_v53  ;;  %vm812_vm6 = vcmp.eq.f32.partialorder %v811_v0, 8.507059e+37 }
 0x365   :  { %v836_v34 = vor.u32 1.1754944e-38, %v835_v5  ;;  %vm834_vm10 = vcmp.eq.f32.partialorder %v833_v23, 8.507059e+37 }
 0x368   :  { %v1430_v49 = vpop.eup %1429 }
 0x369   :  { %v1432_v15 = vpop.eup %1431  ;;  %v803_v61 = vmul.f32 %v1430_v49, %v801_v32  ;;  %vm808_vm3 = vweird.f32 %v1430_v49 }
 0x36a   :  { %v825_v29 = vmul.f32 %v1432_v15, %v823_v26  ;;  %vm809_vm5 = vmor %vm807_vm4, %vm808_vm3  ;;  %vm830_vm7 = vweird.f32 %v1432_v15  ;;  %vm1285_vm4 = vcmask 195584  }
 0x36b   :  { %v804_v62 = vsub.f32 1.0, %v803_v61  ;;  %vm831_vm9 = vmor %vm829_vm8, %vm830_vm7 }
 0x36c   :  { %v826_v43 = vsub.f32 1.0, %v825_v29  ;;  %v958_v29 = vld [vmem:[#allocation4 + $0x28] sm:$0xff] }
 0x36d   :  { %v805_v63 = vmul.f32 %v1430_v49, %v804_v62 }
 0x36e   :  { %v827_v1 = vmul.f32 %v1432_v15, %v826_v43 }
 0x36f   :  { %v806_v3 = vadd.f32 %v1430_v49, %v805_v63 }
 0x370   :  { %v828_v14 = vadd.f32 %v1432_v15, %v827_v1 }
 0x371   :  { %v810_v13 = vsel %vm809_vm5, %v1430_v49, %v806_v3 }
 0x372   :  { %v815_v16 = vsel %vm812_vm6, %v814_v9, %v810_v13  ;;  %v832_v33 = vsel %vm831_vm9, %v1432_v15, %v828_v14  ;;  %v1204_v9 = vld [vmem:[#allocation5] sm:$0xff]  ;;  %v1206_v13 = vld [vmem:[#allocation5 + $0x10] sm:$0xff]  ;;  %v1207_v14 = vld [vmem:[#allocation5 + $0x18] sm:$0xff] }
 0x373   :  { %v841_v21 = vmul.f32 %v815_v16, %v793_v10  ;;  %v837_v35 = vsel %vm834_vm10, %v836_v34, %v832_v33  ;;  %v1205_v10 = vld [vmem:[#allocation5 + $0x8] sm:$0xff]  ;;  %v1054_v33 = vld [vmem:[#allocation3 + $0x30] sm:$0xff]  ;;  %v1967_v34 = vld [vmem:[%s2043_s12] ss:$0 sm:$0xff] }
 0x374   :  { %v844_v36 = vsub.f32 1.0, %v837_v35  ;;  %v846_v39 = vmul.f32 %v837_v35, %v1896_v55 }
 0x375   :  { %v842_v31 = vadd.f32 %v841_v21, %v840_v27  ;;  %v1032_v27 = vld [vmem:[#allocation2 + $0x30] sm:$0xff] }
 0x377   :  { %1433 = vtanh.f32 %v842_v31 }
 0x37d   :  { %v1434_v37 = vpop.eup %1433 }
 0x37e   :  { %v845_v38 = vmul.f32 %v1434_v37, %v844_v36 }
 0x380   :  { %v1920_v40 = vadd.f32 %v846_v39, %v845_v38 }
 0x382   :  { %849 = vst.msk [vmem:[#allocation5 + $0x20] sm:$0xff] %vm60_vm0, %v1920_v40  ;;  %1344 = vmatmul.msk.f32.vlgmr.msra.gmra.mxu3 %vm60_vm0, %v1920_v40  ;;  %1345 = vmatmul.msk.f32.vlgmr.msrb.gmra.mxu0 %vm60_vm0, %v1920_v40 }
 0x383   :  { %1346 = vmatmul.msk.f32.vlgmr.msra.gmra.mxu1 %vm60_vm0, %v1920_v40  ;;  %1141 = vmatpush.msra.mxu3 %v1625_v19 }
 0x385   :  { %1142 = vmatpush.msra.mxu3 %v1658_v25 }
 0x387   :  { %1143 = vmatpush.msra.mxu3 %v1674_v28  ;;  %v1215_v28 = vld [vmem:[%s2042_s11 + $0x18] sm:$0xff] }
 0x388   :  { %1256 = vmatpush.msrb.mxu0 %v1215_v28 }
 0x389   :  { %1144 = vmatpush.msra.mxu3 %v1688_v30  ;;  %v1214_v30 = vld [vmem:[%s2042_s11 + $0x10] sm:$0xff]  ;;  %v1208_v16 = vld [vmem:[#allocation5 + $0x20] sm:$0xff] }
 0x38a   :  { %1257 = vmatpush.msrb.mxu0 %v1214_v30 }
 0x38c   :  { %1258 = vmatpush.msrb.mxu0 %v1213_v24 }
 0x38e   :  { %1259 = vmatpush.msrb.mxu0 %v1212_v17 }
 0x3ff   :  { %v890_v41 = vpop.f32.mrf.mxu0 }
 0x400   :  { %v937_v18 = vadd.f32 %v936_v42, %v890_v41  ;;  %v910_v8 = vpop.f32.mrf.mxu1 }
 0x401   :  { %v911_v60 = vadd.f32 %v1771_v7, %v910_v8 }
 0x402   :  { %v1348_v44 = vmul.f32 -1.442695, %v937_v18 }
 0x404   :  { %1435 = vpow2.f32 %v1348_v44 }
 0x405   :  { %v870_v45 = vpop.f32.mrf.mxu3 }
 0x406   :  { %v915_v47 = vadd.f32 %v914_v46, %v870_v45 }
 0x408   :  { %v1347_v48 = vmul.f32 -1.442695, %v915_v47 }
 0x40a   :  { %v1436_v50 = vpop.eup %1435  ;;  %1437 = vpow2.f32 %v1347_v48 }
 0x40b   :  { %v941_v4 = vadd.f32 1.0, %v1436_v50 }
 0x40d   :  { %1439 = vrcp.f32 %v941_v4  ;;  %v953_v49 = vand.u32 2147483648, %v941_v4  ;;  %vm947_vm1 = vweird.f32 %v941_v4  ;;  %v951_v61 = vand.u32 2147483647, %v941_v4 }
 0x40f   :  { %v954_v53 = vor.u32 1.1754944e-38, %v953_v49  ;;  %vm952_vm3 = vcmp.eq.f32.partialorder %v951_v61, 8.507059e+37 }
 0x410   :  { %v1438_v19 = vpop.eup %1437 }
 0x411   :  { %v919_v11 = vadd.f32 1.0, %v1438_v19 }
 0x413   :  { %1441 = vrcp.f32 %v919_v11  ;;  %v1440_v25 = vpop.eup %1439  ;;  %v931_v20 = vand.u32 2147483648, %v919_v11  ;;  %v929_v57 = vand.u32 2147483647, %v919_v11  ;;  %vm925_vm12 = vweird.f32 %v919_v11 }
 0x414   :  { %v943_v51 = vmul.f32 %v1440_v25, %v941_v4  ;;  %vm948_vm15 = vweird.f32 %v1440_v25 }
 0x415   :  { %v932_v22 = vor.u32 1.1754944e-38, %v931_v20  ;;  %vm930_vm14 = vcmp.eq.f32.partialorder %v929_v57, 8.507059e+37  ;;  %vm949_vm2 = vmor %vm947_vm1, %vm948_vm15  ;;  %v1988_v20 = vld [vmem:[%s2041_s10] ss:$0 sm:$0xff] }
 0x416   :  { %v944_v55 = vsub.f32 1.0, %v943_v51 }
 0x418   :  { %v945_v58 = vmul.f32 %v1440_v25, %v944_v55 }
 0x419   :  { %v1442_v52 = vpop.eup %1441 }
 0x41a   :  { %v921_v54 = vmul.f32 %v1442_v52, %v919_v11  ;;  %vm926_vm11 = vweird.f32 %v1442_v52  ;;  %v946_v32 = vadd.f32 %v1440_v25, %v945_v58 }
 0x41b   :  { %vm927_vm13 = vmor %vm925_vm12, %vm926_vm11 }
 0x41c   :  { %v922_v6 = vsub.f32 1.0, %v921_v54  ;;  %v950_v43 = vsel %vm949_vm2, %v1440_v25, %v946_v32 }
 0x41d   :  { %v955_v63 = vsel %vm952_vm3, %v954_v53, %v950_v43 }
 0x41e   :  { %v923_v56 = vmul.f32 %v1442_v52, %v922_v6  ;;  %v962_v0 = vsub.f32 1.0, %v955_v63  ;;  %v964_v2 = vmul.f32 %v955_v63, %v1920_v40 }
 0x420   :  { %v924_v59 = vadd.f32 %v1442_v52, %v923_v56 }
 0x422   :  { %v928_v12 = vsel %vm927_vm13, %v1442_v52, %v924_v59 }
 0x423   :  { %v933_v26 = vsel %vm930_vm14, %v932_v22, %v928_v12  ;;  %v1076_v12 = vld [vmem:[#allocation4 + $0x30] sm:$0xff] }
 0x424   :  { %v959_v15 = vmul.f32 %v933_v26, %v911_v60 }
 0x426   :  { %v960_v62 = vadd.f32 %v959_v15, %v958_v29 }
 0x428   :  { %1443 = vtanh.f32 %v960_v62 }
 0x42e   :  { %v1444_v1 = vpop.eup %1443 }
 0x42f   :  { %v963_v7 = vmul.f32 %v1444_v1, %v962_v0 }
 0x431   :  { %v1948_v3 = vadd.f32 %v964_v2, %v963_v7 }
 0x433   :  { %967 = vst.msk [vmem:[#allocation5 + $0x28] sm:$0xff] %vm60_vm0, %v1948_v3  ;;  %1349 = vmatmul.msk.f32.vlgmr.msra.gmra.mxu2 %vm60_vm0, %v1948_v3  ;;  %1350 = vmatmul.msk.f32.vlgmr.msrb.gmra.mxu3 %vm60_vm0, %v1948_v3 }
 0x434   :  { %1351 = vmatmul.msk.f32.vlgmr.msra.gmra.mxu0 %vm60_vm0, %v1948_v3 }
 0x43a   :  { %v1209_v5 = vld [vmem:[#allocation5 + $0x28] sm:$0xff] }
 0x43c   :  { %1359 = vmatmul.msk.f32.vlgmr.msrb.gmra.mxu0 %vm60_vm0, %v1204_v9  ;;  %v1150_v9 = vld [vmem:[#allocation2 + $0x38] sm:$0xff] }
 0x444   :  { %1360 = vmatmul.msk.f32.gmra.mxu0 %vm60_vm0, %v1205_v10 }
 0x44c   :  { %1361 = vmatmul.msk.f32.gmra.mxu0 %vm60_vm0, %v1206_v13 }
 0x454   :  { %1362 = vmatmul.msk.f32.gmra.mxu0 %vm60_vm0, %v1207_v14 }
 0x45c   :  { %1363 = vmatmul.msk.f32.gmra.mxu0 %vm60_vm0, %v1208_v16  ;;  %v1172_v16 = vld [vmem:[#allocation3 + $0x38] sm:$0xff] }
 0x464   :  { %1364 = vmatmul.msk.f32.gmra.mxu0 %vm60_vm0, %v1209_v5 }
 0x4b1   :  { %v1028_v21 = vpop.f32.mrf.mxu0 }
 0x4b2   :  { %v1029_v56 = vadd.f32 %v1988_v20, %v1028_v21 }
 0x4b6   :  { %v988_v23 = vpop.f32.mrf.mxu2  ;;  %v1008_v31 = vpop.f32.mrf.mxu3 }
 0x4b7   :  { %v1033_v35 = vadd.f32 %v1032_v27, %v988_v23  ;;  %v1055_v36 = vadd.f32 %v1054_v33, %v1008_v31 }
 0x4b9   :  { %v1352_v37 = vmul.f32 -1.442695, %v1033_v35  ;;  %v1353_v38 = vmul.f32 -1.442695, %v1055_v36  ;;  %v1261_v39 = vpop.f32.mrf.mxu0 }
 0x4ba   :  { %v1262_v40 = vadd.f32 %v1967_v34, %v1261_v39 }
 0x4bb   :  { %1445 = vpow2.f32 %v1352_v37 }
 0x4bc   :  { %1447 = vpow2.f32 %v1353_v38  ;;  %1286 = vst.msk [vmem:[%s2044_s13] sm:$0xff] %vm1285_vm4, %v1262_v40 }
 0x4c1   :  { %v1446_v41 = vpop.eup %1445  ;;  %v1264_v42 = vpop.f32.mrf.mxu0 }
 0x4c2   :  { %v1448_v18 = vpop.eup %1447  ;;  %v1037_v44 = vadd.f32 1.0, %v1446_v41  ;;  %v1265_v45 = vadd.f32 %v1967_v34, %v1264_v42 }
 0x4c3   :  { %v1059_v46 = vadd.f32 1.0, %v1448_v18 }
 0x4c4   :  { %1449 = vrcp.f32 %v1037_v44  ;;  %1287 = vst.msk [vmem:[%s2044_s13 + $0x8] sm:$0xff] %vm1285_vm4, %v1265_v45  ;;  %v1049_v28 = vand.u32 2147483648, %v1037_v44  ;;  %v1047_v51 = vand.u32 2147483647, %v1037_v44  ;;  %vm1043_vm6 = vweird.f32 %v1037_v44 }
 0x4c5   :  { %1451 = vrcp.f32 %v1059_v46  ;;  %v1071_v22 = vand.u32 2147483648, %v1059_v46  ;;  %vm1065_vm10 = vweird.f32 %v1059_v46  ;;  %v1069_v60 = vand.u32 2147483647, %v1059_v46 }
 0x4c6   :  { %v1050_v55 = vor.u32 1.1754944e-38, %v1049_v28  ;;  %vm1048_vm8 = vcmp.eq.f32.partialorder %v1047_v51, 8.507059e+37 }
 0x4c7   :  { %v1072_v49 = vor.u32 1.1754944e-38, %v1071_v22  ;;  %vm1070_vm12 = vcmp.eq.f32.partialorder %v1069_v60, 8.507059e+37 }
 0x4c9   :  { %v1267_v47 = vpop.f32.mrf.mxu0 }
 0x4ca   :  { %v1450_v48 = vpop.eup %1449  ;;  %v1268_v50 = vadd.f32 %v1967_v34, %v1267_v47 }
 0x4cb   :  { %v1452_v4 = vpop.eup %1451  ;;  %v1039_v19 = vmul.f32 %v1450_v48, %v1037_v44  ;;  %vm1044_vm5 = vweird.f32 %v1450_v48 }
 0x4cc   :  { %v1061_v11 = vmul.f32 %v1452_v4, %v1059_v46  ;;  %1288 = vst.msk [vmem:[%s2044_s13 + $0x10] sm:$0xff] %vm1285_vm4, %v1268_v50  ;;  %vm1045_vm7 = vmor %vm1043_vm6, %vm1044_vm5  ;;  %vm1066_vm9 = vweird.f32 %v1452_v4 }
 0x4cd   :  { %v1040_v25 = vsub.f32 1.0, %v1039_v19  ;;  %vm1067_vm11 = vmor %vm1065_vm10, %vm1066_vm9 }
 0x4ce   :  { %v1062_v30 = vsub.f32 1.0, %v1061_v11 }
 0x4cf   :  { %v1041_v24 = vmul.f32 %v1450_v48, %v1040_v25 }
 0x4d0   :  { %v1063_v17 = vmul.f32 %v1452_v4, %v1062_v30 }
 0x4d1   :  { %v1042_v52 = vadd.f32 %v1450_v48, %v1041_v24  ;;  %v1270_v54 = vpop.f32.mrf.mxu0  ;;  %v1194_v24 = vld [vmem:[#allocation4 + $0x38] sm:$0xff] }
 0x4d2   :  { %v1271_v6 = vadd.f32 %v1967_v34, %v1270_v54  ;;  %v1064_v8 = vadd.f32 %v1452_v4, %v1063_v17 }
 0x4d3   :  { %v1046_v57 = vsel %vm1045_vm7, %v1450_v48, %v1042_v52 }
 0x4d4   :  { %v1051_v58 = vsel %vm1048_vm8, %v1050_v55, %v1046_v57  ;;  %1289 = vst.msk [vmem:[%s2044_s13 + $0x18] sm:$0xff] %vm1285_vm4, %v1271_v6  ;;  %v1068_v26 = vsel %vm1067_vm11, %v1452_v4, %v1064_v8 }
 0x4d5   :  { %v1077_v59 = vmul.f32 %v1051_v58, %v1029_v56  ;;  %v1073_v29 = vsel %vm1070_vm12, %v1072_v49, %v1068_v26 }
 0x4d6   :  { %v1080_v62 = vsub.f32 1.0, %v1073_v29  ;;  %v1082_v63 = vmul.f32 %v1073_v29, %v1948_v3 }
 0x4d7   :  { %v1078_v32 = vadd.f32 %v1077_v59, %v1076_v12 }
 0x4d9   :  { %v1273_v15 = vpop.f32.mrf.mxu0  ;;  %1453 = vtanh.f32 %v1078_v32 }
 0x4da   :  { %v1274_v61 = vadd.f32 %v1967_v34, %v1273_v15 }
 0x4dc   :  { %1290 = vst.msk [vmem:[%s2044_s13 + $0x20] sm:$0xff] %vm1285_vm4, %v1274_v61 }
 0x4df   :  { %v1454_v43 = vpop.eup %1453 }
 0x4e0   :  { %v1081_v53 = vmul.f32 %v1454_v43, %v1080_v62 }
 0x4e1   :  { %v1276_v0 = vpop.f32.mrf.mxu0 }
 0x4e2   :  { %v1277_v1 = vadd.f32 %v1967_v34, %v1276_v0  ;;  %v2002_v7 = vadd.f32 %v1082_v63, %v1081_v53 }
 0x4e4   :  { %1291 = vst.msk [vmem:[%s2044_s13 + $0x28] sm:$0xff] %vm1285_vm4, %v1277_v1  ;;  %1354 = vmatmul.msk.f32.vlgmr.msrb.gmra.mxu1 %vm60_vm0, %v2002_v7  ;;  %1355 = vmatmul.msk.f32.vlgmr.msrb.gmra.mxu2 %vm60_vm0, %v2002_v7 }
 0x4e5   :  { %1085 = vst.msk [vmem:[#allocation5 + $0x30] sm:$0xff] %vm60_vm0, %v2002_v7  ;;  %1356 = vmatmul.msk.f32.vlgmr.msra.gmra.mxu3 %vm60_vm0, %v2002_v7 }
 0x4ec   :  { %v1210_v2 = vld [vmem:[#allocation5 + $0x30] sm:$0xff] }
 0x4ed   :  { %1365 = vmatmul.msk.f32.gmra.mxu0 %vm60_vm0, %v1210_v2 }
 0x561   :  { %v1106_v3 = vpop.f32.mrf.mxu1 }
 0x562   :  { %v1151_v10 = vadd.f32 %v1150_v9, %v1106_v3 }
 0x564   :  { %v1357_v13 = vmul.f32 -1.442695, %v1151_v10 }
 0x566   :  { %1455 = vpow2.f32 %v1357_v13 }
 0x567   :  { %v1126_v14 = vpop.f32.mrf.mxu2 }
 0x568   :  { %v1173_v5 = vadd.f32 %v1172_v16, %v1126_v14  ;;  %v1146_v44 = vpop.f32.mrf.mxu3 }
 0x569   :  { %v1147_v50 = vadd.f32 %v1988_v20, %v1146_v44 }
 0x56a   :  { %v1358_v21 = vmul.f32 -1.442695, %v1173_v5  ;;  %v1279_v23 = vpop.f32.mrf.mxu0 }
 0x56b   :  { %v1280_v27 = vadd.f32 %v1967_v34, %v1279_v23 }
 0x56c   :  { %v1456_v31 = vpop.eup %1455  ;;  %1457 = vpow2.f32 %v1358_v21 }
 0x56d   :  { %v1155_v33 = vadd.f32 1.0, %v1456_v31  ;;  %1292 = vst.msk [vmem:[%s2044_s13 + $0x30] sm:$0xff] %vm1285_vm4, %v1280_v27 }
 0x56f   :  { %1459 = vrcp.f32 %v1155_v33  ;;  %v1167_v40 = vand.u32 2147483648, %v1155_v33  ;;  %v1165_v42 = vand.u32 2147483647, %v1155_v33  ;;  %vm1161_vm14 = vweird.f32 %v1155_v33 }
 0x571   :  { %v1168_v47 = vor.u32 1.1754944e-38, %v1167_v40  ;;  %vm1166_vm1 = vcmp.eq.f32.partialorder %v1165_v42, 8.507059e+37 }
 0x572   :  { %v1458_v35 = vpop.eup %1457 }
 0x573   :  { %v1177_v36 = vadd.f32 1.0, %v1458_v35 }
 0x575   :  { %v1460_v37 = vpop.eup %1459  ;;  %1461 = vrcp.f32 %v1177_v36  ;;  %v1189_v25 = vand.u32 2147483648, %v1177_v36  ;;  %v1187_v30 = vand.u32 2147483647, %v1177_v36  ;;  %vm1183_vm3 = vweird.f32 %v1177_v36 }
 0x576   :  { %v1157_v38 = vmul.f32 %v1460_v37, %v1155_v33  ;;  %vm1162_vm13 = vweird.f32 %v1460_v37 }
 0x577   :  { %vm1163_vm15 = vmor %vm1161_vm14, %vm1162_vm13  ;;  %v1190_v52 = vor.u32 1.1754944e-38, %v1189_v25  ;;  %vm1188_vm6 = vcmp.eq.f32.partialorder %v1187_v30, 8.507059e+37 }
 0x578   :  { %v1158_v39 = vsub.f32 1.0, %v1157_v38 }
 0x57a   :  { %v1159_v41 = vmul.f32 %v1460_v37, %v1158_v39 }
 0x57b   :  { %v1462_v18 = vpop.eup %1461 }
 0x57c   :  { %v1179_v45 = vmul.f32 %v1462_v18, %v1177_v36  ;;  %v1160_v46 = vadd.f32 %v1460_v37, %v1159_v41  ;;  %vm1184_vm2 = vweird.f32 %v1462_v18 }
 0x57d   :  { %vm1185_vm5 = vmor %vm1183_vm3, %vm1184_vm2 }
 0x57e   :  { %v1180_v48 = vsub.f32 1.0, %v1179_v45  ;;  %v1164_v4 = vsel %vm1163_vm15, %v1460_v37, %v1160_v46 }
 0x57f   :  { %v1169_v19 = vsel %vm1166_vm1, %v1168_v47, %v1164_v4 }
 0x580   :  { %v1181_v11 = vmul.f32 %v1462_v18, %v1180_v48  ;;  %v1195_v28 = vmul.f32 %v1169_v19, %v1147_v50 }
 0x582   :  { %v1182_v51 = vadd.f32 %v1462_v18, %v1181_v11  ;;  %v1196_v17 = vadd.f32 %v1195_v28, %v1194_v24 }
 0x584   :  { %v1186_v54 = vsel %vm1185_vm5, %v1462_v18, %v1182_v51  ;;  %1463 = vtanh.f32 %v1196_v17 }
 0x585   :  { %v1191_v55 = vsel %vm1188_vm6, %v1190_v52, %v1186_v54 }
 0x586   :  { %v1198_v6 = vsub.f32 1.0, %v1191_v55  ;;  %v1200_v57 = vmul.f32 %v1191_v55, %v2002_v7 }
 0x58a   :  { %v1464_v20 = vpop.eup %1463 }
 0x58b   :  { %v1199_v56 = vmul.f32 %v1464_v20, %v1198_v6 }
 0x58d   :  { %v1201_v58 = vadd.f32 %v1200_v57, %v1199_v56 }
 0x58f   :  { %1203 = vst.msk [vmem:[#allocation5 + $0x38] sm:$0xff] %vm60_vm0, %v1201_v58 }
 0x596   :  { %v1211_v8 = vld [vmem:[#allocation5 + $0x38] sm:$0xff] }
 0x597   :  { %1366 = vmatmul.msk.f32.gmra.mxu0 %vm60_vm0, %v1211_v8 }
 0x614   :  { %v1282_v59 = vpop.f32.mrf.mxu0 }
 0x615   :  { %v1283_v22 = vadd.f32 %v1967_v34, %v1282_v59 }
 0x617   :  { %1293 = vst.msk [vmem:[%s2044_s13 + $0x38] sm:$0xff] %vm1285_vm4, %v1283_v22 }

</bundles_post_ra>
